<compile_context>
chip_gen: v7x
topology: tpu7x:2x2x1
jax: 0.10.0
libtpu: 0.0.40
codegen_flags: <defaults>
</compile_context>

<pallas_src>
import jax
import jax.numpy as jnp
from jax.experimental import pallas as pl
from jax.experimental.pallas import tpu as pltpu


def lstm_kernel(x_ref,                      # (T, Bp, I)  full sequence, time-major, f32
                wih1_ref, b1_ref,           # (I, 4H) f32, (1, 4H) f32   columns [i,f,o,g]
                whh1_ref,                   # (H, 4H) bf16
                wih2_ref, whh2_ref,         # (H, 4H) bf16, (H, 4H) bf16
                b2_ref,                     # (1, 4H) f32
                wfc_ref, bfc_ref,           # (1, H) f32, (1, 1) f32
                out_ref,                    # (Bp, 1) f32
                xproj_ref):                 # VMEM scratch (T, Bp, 4H) f32
    T, B, I = x_ref.shape
    H = whh1_ref.shape[0]

    # ---- Hoisted layer-1 input projection: x @ W_ih1 + b1, computed once. ----
    # I is tiny (1 here), so a broadcast outer product on the VPU beats a
    # degenerate K=I MXU matmul per timestep.
    x = x_ref[...]                                          # (T, Bp, I)
    xproj = x[:, :, 0:1] * wih1_ref[0:1, :] + b1_ref[...]   # (T, Bp, 4H)
    for i in range(1, I):                                   # static; empty for I=1
        xproj = xproj + x[:, :, i:i + 1] * wih1_ref[i:i + 1, :]
    xproj_ref[...] = xproj

    # Hoisted layer-2 bias broadcast, reused by every unrolled iteration.
    b2b = jnp.broadcast_to(b2_ref[...], (B, 4 * H))

    def activate(gates, c_prev):
        # Columns packed [i, f, o, g]: one sigmoid over 3H lanes, one tanh over H.
        sig = jax.nn.sigmoid(gates[:, :3 * H])
        i_g = sig[:, 0:H]
        f_g = sig[:, H:2 * H]
        o_g = sig[:, 2 * H:3 * H]
        g_g = jnp.tanh(gates[:, 3 * H:])
        c_new = f_g * c_prev + i_g * g_g
        h_new = o_g * jnp.tanh(c_new)
        return h_new, c_new

    def step(t, carry):
        h1, c1, h2, c2 = carry
        # Layer-2 recurrent dot depends only on the previous step's h2: issue it
        # first so it overlaps layer-1's dot + activation (off the serial chain).
        g2_rec = jnp.dot(h2.astype(jnp.bfloat16), whh2_ref[...],
                         preferred_element_type=jnp.float32)
        # Layer 1: only the recurrent matmul is on the critical path
        # (input projection + bias already hoisted into xproj).
        g1 = xproj_ref[t] + jnp.dot(h1.astype(jnp.bfloat16), whh1_ref[...],
                                    preferred_element_type=jnp.float32)
        h1n, c1n = activate(g1, c1)
        # Layer 2: only the K=H dot on h1_new remains on the critical path.
        g2 = (jnp.dot(h1n.astype(jnp.bfloat16), wih2_ref[...],
                      preferred_element_type=jnp.float32)
              + g2_rec + b2b)
        h2n, c2n = activate(g2, c2)
        return h1n, c1n, h2n, c2n

    z = jnp.zeros((B, H), jnp.float32)
    _, _, h2, _ = jax.lax.fori_loop(0, T, step, (z, z, z, z), unroll=True)

    # Final nn.Linear on the last timestep's top-layer hidden state.
    # N=1 is a degenerate MXU shape -> VPU multiply + lane reduction instead.
    out_ref[...] = (jnp.sum(h2 * wfc_ref[...], axis=-1, keepdims=True)
                    + bfc_ref[...]).astype(out_ref.dtype)


def _repack_gates(w):
    """Permute PyTorch gate column order [i, f, g, o] -> [i, f, o, g]."""
    H = w.shape[-1] // 4
    return jnp.concatenate(
        [w[..., :2 * H], w[..., 3 * H:], w[..., 2 * H:3 * H]], axis=-1)


def price_predictor_forward(x, params):
    """x: (B, T, I) batch_first float32. Returns (B, 1). Mirrors PricePredictor."""
    B, T, I = x.shape
    H = params["whh1"].shape[0]

    # Sublane-align the batch (f32 sublane count = 8). Per-step latency is
    # unchanged; padded rows are junk sequences discarded at the end.
    Bp = ((B + 7) // 8) * 8
    x_tbi = jnp.transpose(x, (1, 0, 2))                     # (T, B, I) time-major
    if Bp != B:
        x_tbi = jnp.pad(x_tbi, ((0, 0), (0, Bp - B), (0, 0)))

    # Kernel-side weight layout: gate columns re-packed to [i, f, o, g].
    # MXU operands (the three recurrent-path weights) are pre-cast to bf16;
    # VPU-path tensors (input projection, biases, FC row) stay f32.
    wih1 = _repack_gates(params["wih1"])
    b1 = _repack_gates(params["b1"])
    whh1 = _repack_gates(params["whh1"]).astype(jnp.bfloat16)
    wih2 = _repack_gates(params["wih2"]).astype(jnp.bfloat16)
    whh2 = _repack_gates(params["whh2"]).astype(jnp.bfloat16)
    b2 = _repack_gates(params["b2"])
    wfc_row = params["wfc"].T                               # (1, H)
    bfc = params["bfc"]                                     # (1, 1)

    vmem = pl.BlockSpec(memory_space=pltpu.MemorySpace.VMEM)
    out = pl.pallas_call(
        lstm_kernel,
        out_shape=jax.ShapeDtypeStruct((Bp, 1), jnp.float32),
        in_specs=[vmem] * 9,
        out_specs=vmem,
        scratch_shapes=[pltpu.VMEM((T, Bp, 4 * H), jnp.float32)],
    )(x_tbi, wih1, b1, whh1, wih2, whh2, b2, wfc_row, bfc)
    return out[:B]


def init_params(key, input_size=1, hidden_size=64):
    """Deterministic init mirroring PyTorch shapes (weights pre-transposed to
    (in_features, 4H), gate order [i, f, g, o] exactly as nn.LSTM stores them)."""
    H, I = hidden_size, input_size
    k = jax.random.split(key, 10)
    bound = 1.0 / jnp.sqrt(H)
    u = lambda kk, shape: jax.random.uniform(kk, shape, jnp.float32, -bound, bound)
    return {
        "wih1": u(k[0], (I, 4 * H)),
        "whh1": u(k[1], (H, 4 * H)),
        "b1":   (u(k[2], (1, 4 * H)) + u(k[3], (1, 4 * H))),  # b_ih + b_hh
        "wih2": u(k[4], (H, 4 * H)),
        "whh2": u(k[5], (H, 4 * H)),
        "b2":   (u(k[6], (1, 4 * H)) + u(k[7], (1, 4 * H))),
        "wfc":  u(k[8], (H, 1)),
        "bfc":  u(k[9], (1, 1)),
    }


def reference_forward(x, params):
    """Pure-JAX f32 reference of the same 2-layer LSTM + Linear (PyTorch gate order)."""
    B, T, I = x.shape
    H = params["whh1"].shape[0]

    def cell(x_t, h, c, wih, whh, b):
        g = x_t @ wih + h @ whh + b
        i = jax.nn.sigmoid(g[:, 0:H])
        f = jax.nn.sigmoid(g[:, H:2 * H])
        gg = jnp.tanh(g[:, 2 * H:3 * H])
        o = jax.nn.sigmoid(g[:, 3 * H:4 * H])
        c = f * c + i * gg
        h = o * jnp.tanh(c)
        return h, c

    h1 = jnp.zeros((B, H)); c1 = jnp.zeros((B, H))
    h2 = jnp.zeros((B, H)); c2 = jnp.zeros((B, H))
    for t in range(T):
        x_t = x[:, t, :]
        h1, c1 = cell(x_t, h1, c1, params["wih1"], params["whh1"], params["b1"])
        h2, c2 = cell(h1, h2, c2, params["wih2"], params["whh2"], params["b2"])
    return h2 @ params["wfc"] + params["bfc"]


if __name__ == "__main__":
    B, T, I, H = 2, 8, 1, 64
    key = jax.random.PRNGKey(0)
    k_x, k_p = jax.random.split(key)
    x = jax.random.normal(k_x, (B, T, I), jnp.float32)
    params = init_params(k_p, input_size=I, hidden_size=H)

    out = jax.block_until_ready(price_predictor_forward(x, params))

    ref = reference_forward(x, params)
    assert out.shape == (B, 1)
    # Tolerance loosened vs the f32 reference because the recurrent matmuls use
    # bf16 MXU operands (f32 accumulation / elementwise math).
    assert jnp.allclose(out, ref, atol=2e-2, rtol=2e-2), (out, ref)
    print("KERNEL_OK")
</pallas_src>

<mosaic_0001>
module attributes {stable_mosaic.version = 11 : i64} {
  func.func @lstm_kernel(%arg0: memref<8x8x1xf32, #tpu.memory_space<vmem>>, %arg1: memref<1x256xf32, #tpu.memory_space<vmem>>, %arg2: memref<1x256xf32, #tpu.memory_space<vmem>>, %arg3: memref<64x256xbf16, #tpu.memory_space<vmem>>, %arg4: memref<64x256xbf16, #tpu.memory_space<vmem>>, %arg5: memref<64x256xbf16, #tpu.memory_space<vmem>>, %arg6: memref<1x256xf32, #tpu.memory_space<vmem>>, %arg7: memref<1x64xf32, #tpu.memory_space<vmem>>, %arg8: memref<1x1xf32, #tpu.memory_space<vmem>>, %arg9: memref<8x1xf32, #tpu.memory_space<vmem>>, %arg10: memref<8x8x256xf32, #tpu.memory_space<vmem>>) attributes {dimension_semantics = [], scalar_prefetch = 0 : i64, scratch_operands = 1 : i64, tpu.core_type = #tpu.core_type<tc>} {
    %c0 = arith.constant 0 : index
    %c0_0 = arith.constant 0 : index
    %c0_1 = arith.constant 0 : index
    %0 = vector.load %arg0[%c0, %c0_0, %c0_1] : memref<8x8x1xf32, #tpu.memory_space<vmem>>, vector<8x8x1xf32>
    %c0_2 = arith.constant 0 : index
    %c0_3 = arith.constant 0 : index
    %1 = vector.load %arg1[%c0_2, %c0_3] : memref<1x256xf32, #tpu.memory_space<vmem>>, vector<1x256xf32>
    %2 = vector.shape_cast %1 : vector<1x256xf32> to vector<1x1x256xf32>
    %3 = vector.broadcast %0 : vector<8x8x1xf32> to vector<8x8x256xf32>
    %4 = vector.broadcast %2 : vector<1x1x256xf32> to vector<8x8x256xf32>
    %5 = arith.mulf %3, %4 : vector<8x8x256xf32>
    %c0_4 = arith.constant 0 : index
    %c0_5 = arith.constant 0 : index
    %6 = vector.load %arg2[%c0_4, %c0_5] : memref<1x256xf32, #tpu.memory_space<vmem>>, vector<1x256xf32>
    %7 = vector.shape_cast %6 : vector<1x256xf32> to vector<1x1x256xf32>
    %8 = vector.broadcast %7 : vector<1x1x256xf32> to vector<8x8x256xf32>
    %9 = arith.addf %5, %8 : vector<8x8x256xf32>
    %c0_6 = arith.constant 0 : index
    %c0_7 = arith.constant 0 : index
    %c0_8 = arith.constant 0 : index
    %10 = vector.load %arg10[%c0_6, %c0_7, %c0_8] : memref<8x8x256xf32, #tpu.memory_space<vmem>>, vector<8x8x256xf32>
    tpu.vector_store %arg10[%c0_6, %c0_7, %c0_8], %9 {strides = array<i32>} : memref<8x8x256xf32, #tpu.memory_space<vmem>>, vector<8x8x256xf32>,
    %c0_9 = arith.constant 0 : index
    %c0_10 = arith.constant 0 : index
    %11 = vector.load %arg6[%c0_9, %c0_10] : memref<1x256xf32, #tpu.memory_space<vmem>>, vector<1x256xf32>
    %12 = vector.shape_cast %11 : vector<1x256xf32> to vector<1x256xf32>
    %13 = vector.broadcast %12 : vector<1x256xf32> to vector<8x256xf32>
    %cst = arith.constant 0.000000e+00 : f32
    %14 = vector.broadcast %cst : f32 to vector<8x64xf32>
    %c0_i32 = arith.constant 0 : i32
    %15 = arith.truncf %14 : vector<8x64xf32> to vector<8x64xbf16>
    %c0_11 = arith.constant 0 : index
    %c0_12 = arith.constant 0 : index
    %16 = vector.load %arg5[%c0_11, %c0_12] : memref<64x256xbf16, #tpu.memory_space<vmem>>, vector<64x256xbf16>
    %cst_13 = arith.constant dense<0.000000e+00> : vector<8x256xf32>
    %17 = tpu.matmul %15, %16, %cst_13 {dimension_numbers = #tpu.dot_dimension_numbers<[1], [0], [0], [1], [0, 0, 1, 1], [], []>} : vector<8x64xbf16>, vector<64x256xbf16>, vector<8x256xf32> -> vector<8x256xf32>
    %18 = arith.index_cast %c0_i32 : i32 to index
    %c0_14 = arith.constant 0 : index
    %c0_15 = arith.constant 0 : index
    %19 = vector.load %arg10[%18, %c0_14, %c0_15] : memref<8x8x256xf32, #tpu.memory_space<vmem>>, vector<1x8x256xf32>
    %20 = vector.shape_cast %19 : vector<1x8x256xf32> to vector<8x256xf32>
    %21 = arith.truncf %14 : vector<8x64xf32> to vector<8x64xbf16>
    %c0_16 = arith.constant 0 : index
    %c0_17 = arith.constant 0 : index
    %22 = vector.load %arg3[%c0_16, %c0_17] : memref<64x256xbf16, #tpu.memory_space<vmem>>, vector<64x256xbf16>
    %cst_18 = arith.constant dense<0.000000e+00> : vector<8x256xf32>
    %23 = tpu.matmul %21, %22, %cst_18 {dimension_numbers = #tpu.dot_dimension_numbers<[1], [0], [0], [1], [0, 0, 1, 1], [], []>} : vector<8x64xbf16>, vector<64x256xbf16>, vector<8x256xf32> -> vector<8x256xf32>
    %24 = arith.addf %20, %23 : vector<8x256xf32>
    %25 = vector.extract_strided_slice %24 {offsets = [0, 0], sizes = [8, 192], strides = [1, 1]} : vector<8x256xf32> to vector<8x192xf32>
    %26 = arith.negf %25 : vector<8x192xf32>
    %27 = math.exp %26 : vector<8x192xf32>
    %cst_19 = arith.constant 1.000000e+00 : f32
    %28 = vector.broadcast %cst_19 : f32 to vector<8x192xf32>
    %29 = arith.addf %28, %27 : vector<8x192xf32>
    %30 = arith.divf %28, %29 : vector<8x192xf32>
    %31 = vector.extract_strided_slice %30 {offsets = [0, 0], sizes = [8, 64], strides = [1, 1]} : vector<8x192xf32> to vector<8x64xf32>
    %32 = vector.extract_strided_slice %30 {offsets = [0, 64], sizes = [8, 64], strides = [1, 1]} : vector<8x192xf32> to vector<8x64xf32>
    %33 = vector.extract_strided_slice %30 {offsets = [0, 128], sizes = [8, 64], strides = [1, 1]} : vector<8x192xf32> to vector<8x64xf32>
    %34 = vector.extract_strided_slice %24 {offsets = [0, 192], sizes = [8, 64], strides = [1, 1]} : vector<8x256xf32> to vector<8x64xf32>
    %35 = math.tanh %34 : vector<8x64xf32>
    %36 = arith.mulf %32, %14 : vector<8x64xf32>
    %37 = arith.mulf %31, %35 : vector<8x64xf32>
    %38 = arith.addf %36, %37 : vector<8x64xf32>
    %39 = math.tanh %38 : vector<8x64xf32>
    %40 = arith.mulf %33, %39 : vector<8x64xf32>
    %41 = arith.truncf %40 : vector<8x64xf32> to vector<8x64xbf16>
    %c0_20 = arith.constant 0 : index
    %c0_21 = arith.constant 0 : index
    %42 = vector.load %arg4[%c0_20, %c0_21] : memref<64x256xbf16, #tpu.memory_space<vmem>>, vector<64x256xbf16>
    %cst_22 = arith.constant dense<0.000000e+00> : vector<8x256xf32>
    %43 = tpu.matmul %41, %42, %cst_22 {dimension_numbers = #tpu.dot_dimension_numbers<[1], [0], [0], [1], [0, 0, 1, 1], [], []>} : vector<8x64xbf16>, vector<64x256xbf16>, vector<8x256xf32> -> vector<8x256xf32>
    %44 = arith.addf %43, %17 : vector<8x256xf32>
    %45 = arith.addf %44, %13 : vector<8x256xf32>
    %46 = vector.extract_strided_slice %45 {offsets = [0, 0], sizes = [8, 192], strides = [1, 1]} : vector<8x256xf32> to vector<8x192xf32>
    %47 = arith.negf %46 : vector<8x192xf32>
    %48 = math.exp %47 : vector<8x192xf32>
    %cst_23 = arith.constant 1.000000e+00 : f32
    %49 = vector.broadcast %cst_23 : f32 to vector<8x192xf32>
    %50 = arith.addf %49, %48 : vector<8x192xf32>
    %51 = arith.divf %49, %50 : vector<8x192xf32>
    %52 = vector.extract_strided_slice %51 {offsets = [0, 0], sizes = [8, 64], strides = [1, 1]} : vector<8x192xf32> to vector<8x64xf32>
    %53 = vector.extract_strided_slice %51 {offsets = [0, 64], sizes = [8, 64], strides = [1, 1]} : vector<8x192xf32> to vector<8x64xf32>
    %54 = vector.extract_strided_slice %51 {offsets = [0, 128], sizes = [8, 64], strides = [1, 1]} : vector<8x192xf32> to vector<8x64xf32>
    %55 = vector.extract_strided_slice %45 {offsets = [0, 192], sizes = [8, 64], strides = [1, 1]} : vector<8x256xf32> to vector<8x64xf32>
    %56 = math.tanh %55 : vector<8x64xf32>
    %57 = arith.mulf %53, %14 : vector<8x64xf32>
    %58 = arith.mulf %52, %56 : vector<8x64xf32>
    %59 = arith.addf %57, %58 : vector<8x64xf32>
    %60 = math.tanh %59 : vector<8x64xf32>
    %61 = arith.mulf %54, %60 : vector<8x64xf32>
    %c1_i32 = arith.constant 1 : i32
    %62 = arith.truncf %61 : vector<8x64xf32> to vector<8x64xbf16>
    %c0_24 = arith.constant 0 : index
    %c0_25 = arith.constant 0 : index
    %63 = vector.load %arg5[%c0_24, %c0_25] : memref<64x256xbf16, #tpu.memory_space<vmem>>, vector<64x256xbf16>
    %cst_26 = arith.constant dense<0.000000e+00> : vector<8x256xf32>
    %64 = tpu.matmul %62, %63, %cst_26 {dimension_numbers = #tpu.dot_dimension_numbers<[1], [0], [0], [1], [0, 0, 1, 1], [], []>} : vector<8x64xbf16>, vector<64x256xbf16>, vector<8x256xf32> -> vector<8x256xf32>
    %65 = arith.index_cast %c1_i32 : i32 to index
    %c0_27 = arith.constant 0 : index
    %c0_28 = arith.constant 0 : index
    %66 = vector.load %arg10[%65, %c0_27, %c0_28] : memref<8x8x256xf32, #tpu.memory_space<vmem>>, vector<1x8x256xf32>
    %67 = vector.shape_cast %66 : vector<1x8x256xf32> to vector<8x256xf32>
    %68 = arith.truncf %40 : vector<8x64xf32> to vector<8x64xbf16>
    %c0_29 = arith.constant 0 : index
    %c0_30 = arith.constant 0 : index
    %69 = vector.load %arg3[%c0_29, %c0_30] : memref<64x256xbf16, #tpu.memory_space<vmem>>, vector<64x256xbf16>
    %cst_31 = arith.constant dense<0.000000e+00> : vector<8x256xf32>
    %70 = tpu.matmul %68, %69, %cst_31 {dimension_numbers = #tpu.dot_dimension_numbers<[1], [0], [0], [1], [0, 0, 1, 1], [], []>} : vector<8x64xbf16>, vector<64x256xbf16>, vector<8x256xf32> -> vector<8x256xf32>
    %71 = arith.addf %67, %70 : vector<8x256xf32>
    %72 = vector.extract_strided_slice %71 {offsets = [0, 0], sizes = [8, 192], strides = [1, 1]} : vector<8x256xf32> to vector<8x192xf32>
    %73 = arith.negf %72 : vector<8x192xf32>
    %74 = math.exp %73 : vector<8x192xf32>
    %cst_32 = arith.constant 1.000000e+00 : f32
    %75 = vector.broadcast %cst_32 : f32 to vector<8x192xf32>
    %76 = arith.addf %75, %74 : vector<8x192xf32>
    %77 = arith.divf %75, %76 : vector<8x192xf32>
    %78 = vector.extract_strided_slice %77 {offsets = [0, 0], sizes = [8, 64], strides = [1, 1]} : vector<8x192xf32> to vector<8x64xf32>
    %79 = vector.extract_strided_slice %77 {offsets = [0, 64], sizes = [8, 64], strides = [1, 1]} : vector<8x192xf32> to vector<8x64xf32>
    %80 = vector.extract_strided_slice %77 {offsets = [0, 128], sizes = [8, 64], strides = [1, 1]} : vector<8x192xf32> to vector<8x64xf32>
    %81 = vector.extract_strided_slice %71 {offsets = [0, 192], sizes = [8, 64], strides = [1, 1]} : vector<8x256xf32> to vector<8x64xf32>
    %82 = math.tanh %81 : vector<8x64xf32>
    %83 = arith.mulf %79, %38 : vector<8x64xf32>
    %84 = arith.mulf %78, %82 : vector<8x64xf32>
    %85 = arith.addf %83, %84 : vector<8x64xf32>
    %86 = math.tanh %85 : vector<8x64xf32>
    %87 = arith.mulf %80, %86 : vector<8x64xf32>
    %88 = arith.truncf %87 : vector<8x64xf32> to vector<8x64xbf16>
    %c0_33 = arith.constant 0 : index
    %c0_34 = arith.constant 0 : index
    %89 = vector.load %arg4[%c0_33, %c0_34] : memref<64x256xbf16, #tpu.memory_space<vmem>>, vector<64x256xbf16>
    %cst_35 = arith.constant dense<0.000000e+00> : vector<8x256xf32>
    %90 = tpu.matmul %88, %89, %cst_35 {dimension_numbers = #tpu.dot_dimension_numbers<[1], [0], [0], [1], [0, 0, 1, 1], [], []>} : vector<8x64xbf16>, vector<64x256xbf16>, vector<8x256xf32> -> vector<8x256xf32>
    %91 = arith.addf %90, %64 : vector<8x256xf32>
    %92 = arith.addf %91, %13 : vector<8x256xf32>
    %93 = vector.extract_strided_slice %92 {offsets = [0, 0], sizes = [8, 192], strides = [1, 1]} : vector<8x256xf32> to vector<8x192xf32>
    %94 = arith.negf %93 : vector<8x192xf32>
    %95 = math.exp %94 : vector<8x192xf32>
    %cst_36 = arith.constant 1.000000e+00 : f32
    %96 = vector.broadcast %cst_36 : f32 to vector<8x192xf32>
    %97 = arith.addf %96, %95 : vector<8x192xf32>
    %98 = arith.divf %96, %97 : vector<8x192xf32>
    %99 = vector.extract_strided_slice %98 {offsets = [0, 0], sizes = [8, 64], strides = [1, 1]} : vector<8x192xf32> to vector<8x64xf32>
    %100 = vector.extract_strided_slice %98 {offsets = [0, 64], sizes = [8, 64], strides = [1, 1]} : vector<8x192xf32> to vector<8x64xf32>
    %101 = vector.extract_strided_slice %98 {offsets = [0, 128], sizes = [8, 64], strides = [1, 1]} : vector<8x192xf32> to vector<8x64xf32>
    %102 = vector.extract_strided_slice %92 {offsets = [0, 192], sizes = [8, 64], strides = [1, 1]} : vector<8x256xf32> to vector<8x64xf32>
    %103 = math.tanh %102 : vector<8x64xf32>
    %104 = arith.mulf %100, %59 : vector<8x64xf32>
    %105 = arith.mulf %99, %103 : vector<8x64xf32>
    %106 = arith.addf %104, %105 : vector<8x64xf32>
    %107 = math.tanh %106 : vector<8x64xf32>
    %108 = arith.mulf %101, %107 : vector<8x64xf32>
    %c2_i32 = arith.constant 2 : i32
    %109 = arith.truncf %108 : vector<8x64xf32> to vector<8x64xbf16>
    %c0_37 = arith.constant 0 : index
    %c0_38 = arith.constant 0 : index
    %110 = vector.load %arg5[%c0_37, %c0_38] : memref<64x256xbf16, #tpu.memory_space<vmem>>, vector<64x256xbf16>
    %cst_39 = arith.constant dense<0.000000e+00> : vector<8x256xf32>
    %111 = tpu.matmul %109, %110, %cst_39 {dimension_numbers = #tpu.dot_dimension_numbers<[1], [0], [0], [1], [0, 0, 1, 1], [], []>} : vector<8x64xbf16>, vector<64x256xbf16>, vector<8x256xf32> -> vector<8x256xf32>
    %112 = arith.index_cast %c2_i32 : i32 to index
    %c0_40 = arith.constant 0 : index
    %c0_41 = arith.constant 0 : index
    %113 = vector.load %arg10[%112, %c0_40, %c0_41] : memref<8x8x256xf32, #tpu.memory_space<vmem>>, vector<1x8x256xf32>
    %114 = vector.shape_cast %113 : vector<1x8x256xf32> to vector<8x256xf32>
    %115 = arith.truncf %87 : vector<8x64xf32> to vector<8x64xbf16>
    %c0_42 = arith.constant 0 : index
    %c0_43 = arith.constant 0 : index
    %116 = vector.load %arg3[%c0_42, %c0_43] : memref<64x256xbf16, #tpu.memory_space<vmem>>, vector<64x256xbf16>
    %cst_44 = arith.constant dense<0.000000e+00> : vector<8x256xf32>
    %117 = tpu.matmul %115, %116, %cst_44 {dimension_numbers = #tpu.dot_dimension_numbers<[1], [0], [0], [1], [0, 0, 1, 1], [], []>} : vector<8x64xbf16>, vector<64x256xbf16>, vector<8x256xf32> -> vector<8x256xf32>
    %118 = arith.addf %114, %117 : vector<8x256xf32>
    %119 = vector.extract_strided_slice %118 {offsets = [0, 0], sizes = [8, 192], strides = [1, 1]} : vector<8x256xf32> to vector<8x192xf32>
    %120 = arith.negf %119 : vector<8x192xf32>
    %121 = math.exp %120 : vector<8x192xf32>
    %cst_45 = arith.constant 1.000000e+00 : f32
    %122 = vector.broadcast %cst_45 : f32 to vector<8x192xf32>
    %123 = arith.addf %122, %121 : vector<8x192xf32>
    %124 = arith.divf %122, %123 : vector<8x192xf32>
    %125 = vector.extract_strided_slice %124 {offsets = [0, 0], sizes = [8, 64], strides = [1, 1]} : vector<8x192xf32> to vector<8x64xf32>
    %126 = vector.extract_strided_slice %124 {offsets = [0, 64], sizes = [8, 64], strides = [1, 1]} : vector<8x192xf32> to vector<8x64xf32>
    %127 = vector.extract_strided_slice %124 {offsets = [0, 128], sizes = [8, 64], strides = [1, 1]} : vector<8x192xf32> to vector<8x64xf32>
    %128 = vector.extract_strided_slice %118 {offsets = [0, 192], sizes = [8, 64], strides = [1, 1]} : vector<8x256xf32> to vector<8x64xf32>
    %129 = math.tanh %128 : vector<8x64xf32>
    %130 = arith.mulf %126, %85 : vector<8x64xf32>
    %131 = arith.mulf %125, %129 : vector<8x64xf32>
    %132 = arith.addf %130, %131 : vector<8x64xf32>
    %133 = math.tanh %132 : vector<8x64xf32>
    %134 = arith.mulf %127, %133 : vector<8x64xf32>
    %135 = arith.truncf %134 : vector<8x64xf32> to vector<8x64xbf16>
    %c0_46 = arith.constant 0 : index
    %c0_47 = arith.constant 0 : index
    %136 = vector.load %arg4[%c0_46, %c0_47] : memref<64x256xbf16, #tpu.memory_space<vmem>>, vector<64x256xbf16>
    %cst_48 = arith.constant dense<0.000000e+00> : vector<8x256xf32>
    %137 = tpu.matmul %135, %136, %cst_48 {dimension_numbers = #tpu.dot_dimension_numbers<[1], [0], [0], [1], [0, 0, 1, 1], [], []>} : vector<8x64xbf16>, vector<64x256xbf16>, vector<8x256xf32> -> vector<8x256xf32>
    %138 = arith.addf %137, %111 : vector<8x256xf32>
    %139 = arith.addf %138, %13 : vector<8x256xf32>
    %140 = vector.extract_strided_slice %139 {offsets = [0, 0], sizes = [8, 192], strides = [1, 1]} : vector<8x256xf32> to vector<8x192xf32>
    %141 = arith.negf %140 : vector<8x192xf32>
    %142 = math.exp %141 : vector<8x192xf32>
    %cst_49 = arith.constant 1.000000e+00 : f32
    %143 = vector.broadcast %cst_49 : f32 to vector<8x192xf32>
    %144 = arith.addf %143, %142 : vector<8x192xf32>
    %145 = arith.divf %143, %144 : vector<8x192xf32>
    %146 = vector.extract_strided_slice %145 {offsets = [0, 0], sizes = [8, 64], strides = [1, 1]} : vector<8x192xf32> to vector<8x64xf32>
    %147 = vector.extract_strided_slice %145 {offsets = [0, 64], sizes = [8, 64], strides = [1, 1]} : vector<8x192xf32> to vector<8x64xf32>
    %148 = vector.extract_strided_slice %145 {offsets = [0, 128], sizes = [8, 64], strides = [1, 1]} : vector<8x192xf32> to vector<8x64xf32>
    %149 = vector.extract_strided_slice %139 {offsets = [0, 192], sizes = [8, 64], strides = [1, 1]} : vector<8x256xf32> to vector<8x64xf32>
    %150 = math.tanh %149 : vector<8x64xf32>
    %151 = arith.mulf %147, %106 : vector<8x64xf32>
    %152 = arith.mulf %146, %150 : vector<8x64xf32>
    %153 = arith.addf %151, %152 : vector<8x64xf32>
    %154 = math.tanh %153 : vector<8x64xf32>
    %155 = arith.mulf %148, %154 : vector<8x64xf32>
    %c3_i32 = arith.constant 3 : i32
    %156 = arith.truncf %155 : vector<8x64xf32> to vector<8x64xbf16>
    %c0_50 = arith.constant 0 : index
    %c0_51 = arith.constant 0 : index
    %157 = vector.load %arg5[%c0_50, %c0_51] : memref<64x256xbf16, #tpu.memory_space<vmem>>, vector<64x256xbf16>
    %cst_52 = arith.constant dense<0.000000e+00> : vector<8x256xf32>
    %158 = tpu.matmul %156, %157, %cst_52 {dimension_numbers = #tpu.dot_dimension_numbers<[1], [0], [0], [1], [0, 0, 1, 1], [], []>} : vector<8x64xbf16>, vector<64x256xbf16>, vector<8x256xf32> -> vector<8x256xf32>
    %159 = arith.index_cast %c3_i32 : i32 to index
    %c0_53 = arith.constant 0 : index
    %c0_54 = arith.constant 0 : index
    %160 = vector.load %arg10[%159, %c0_53, %c0_54] : memref<8x8x256xf32, #tpu.memory_space<vmem>>, vector<1x8x256xf32>
    %161 = vector.shape_cast %160 : vector<1x8x256xf32> to vector<8x256xf32>
    %162 = arith.truncf %134 : vector<8x64xf32> to vector<8x64xbf16>
    %c0_55 = arith.constant 0 : index
    %c0_56 = arith.constant 0 : index
    %163 = vector.load %arg3[%c0_55, %c0_56] : memref<64x256xbf16, #tpu.memory_space<vmem>>, vector<64x256xbf16>
    %cst_57 = arith.constant dense<0.000000e+00> : vector<8x256xf32>
    %164 = tpu.matmul %162, %163, %cst_57 {dimension_numbers = #tpu.dot_dimension_numbers<[1], [0], [0], [1], [0, 0, 1, 1], [], []>} : vector<8x64xbf16>, vector<64x256xbf16>, vector<8x256xf32> -> vector<8x256xf32>
    %165 = arith.addf %161, %164 : vector<8x256xf32>
    %166 = vector.extract_strided_slice %165 {offsets = [0, 0], sizes = [8, 192], strides = [1, 1]} : vector<8x256xf32> to vector<8x192xf32>
    %167 = arith.negf %166 : vector<8x192xf32>
    %168 = math.exp %167 : vector<8x192xf32>
    %cst_58 = arith.constant 1.000000e+00 : f32
    %169 = vector.broadcast %cst_58 : f32 to vector<8x192xf32>
    %170 = arith.addf %169, %168 : vector<8x192xf32>
    %171 = arith.divf %169, %170 : vector<8x192xf32>
    %172 = vector.extract_strided_slice %171 {offsets = [0, 0], sizes = [8, 64], strides = [1, 1]} : vector<8x192xf32> to vector<8x64xf32>
    %173 = vector.extract_strided_slice %171 {offsets = [0, 64], sizes = [8, 64], strides = [1, 1]} : vector<8x192xf32> to vector<8x64xf32>
    %174 = vector.extract_strided_slice %171 {offsets = [0, 128], sizes = [8, 64], strides = [1, 1]} : vector<8x192xf32> to vector<8x64xf32>
    %175 = vector.extract_strided_slice %165 {offsets = [0, 192], sizes = [8, 64], strides = [1, 1]} : vector<8x256xf32> to vector<8x64xf32>
    %176 = math.tanh %175 : vector<8x64xf32>
    %177 = arith.mulf %173, %132 : vector<8x64xf32>
    %178 = arith.mulf %172, %176 : vector<8x64xf32>
    %179 = arith.addf %177, %178 : vector<8x64xf32>
    %180 = math.tanh %179 : vector<8x64xf32>
    %181 = arith.mulf %174, %180 : vector<8x64xf32>
    %182 = arith.truncf %181 : vector<8x64xf32> to vector<8x64xbf16>
    %c0_59 = arith.constant 0 : index
    %c0_60 = arith.constant 0 : index
    %183 = vector.load %arg4[%c0_59, %c0_60] : memref<64x256xbf16, #tpu.memory_space<vmem>>, vector<64x256xbf16>
    %cst_61 = arith.constant dense<0.000000e+00> : vector<8x256xf32>
    %184 = tpu.matmul %182, %183, %cst_61 {dimension_numbers = #tpu.dot_dimension_numbers<[1], [0], [0], [1], [0, 0, 1, 1], [], []>} : vector<8x64xbf16>, vector<64x256xbf16>, vector<8x256xf32> -> vector<8x256xf32>
    %185 = arith.addf %184, %158 : vector<8x256xf32>
    %186 = arith.addf %185, %13 : vector<8x256xf32>
    %187 = vector.extract_strided_slice %186 {offsets = [0, 0], sizes = [8, 192], strides = [1, 1]} : vector<8x256xf32> to vector<8x192xf32>
    %188 = arith.negf %187 : vector<8x192xf32>
    %189 = math.exp %188 : vector<8x192xf32>
    %cst_62 = arith.constant 1.000000e+00 : f32
    %190 = vector.broadcast %cst_62 : f32 to vector<8x192xf32>
    %191 = arith.addf %190, %189 : vector<8x192xf32>
    %192 = arith.divf %190, %191 : vector<8x192xf32>
    %193 = vector.extract_strided_slice %192 {offsets = [0, 0], sizes = [8, 64], strides = [1, 1]} : vector<8x192xf32> to vector<8x64xf32>
    %194 = vector.extract_strided_slice %192 {offsets = [0, 64], sizes = [8, 64], strides = [1, 1]} : vector<8x192xf32> to vector<8x64xf32>
    %195 = vector.extract_strided_slice %192 {offsets = [0, 128], sizes = [8, 64], strides = [1, 1]} : vector<8x192xf32> to vector<8x64xf32>
    %196 = vector.extract_strided_slice %186 {offsets = [0, 192], sizes = [8, 64], strides = [1, 1]} : vector<8x256xf32> to vector<8x64xf32>
    %197 = math.tanh %196 : vector<8x64xf32>
    %198 = arith.mulf %194, %153 : vector<8x64xf32>
    %199 = arith.mulf %193, %197 : vector<8x64xf32>
    %200 = arith.addf %198, %199 : vector<8x64xf32>
    %201 = math.tanh %200 : vector<8x64xf32>
    %202 = arith.mulf %195, %201 : vector<8x64xf32>
    %c4_i32 = arith.constant 4 : i32
    %203 = arith.truncf %202 : vector<8x64xf32> to vector<8x64xbf16>
    %c0_63 = arith.constant 0 : index
    %c0_64 = arith.constant 0 : index
    %204 = vector.load %arg5[%c0_63, %c0_64] : memref<64x256xbf16, #tpu.memory_space<vmem>>, vector<64x256xbf16>
    %cst_65 = arith.constant dense<0.000000e+00> : vector<8x256xf32>
    %205 = tpu.matmul %203, %204, %cst_65 {dimension_numbers = #tpu.dot_dimension_numbers<[1], [0], [0], [1], [0, 0, 1, 1], [], []>} : vector<8x64xbf16>, vector<64x256xbf16>, vector<8x256xf32> -> vector<8x256xf32>
    %206 = arith.index_cast %c4_i32 : i32 to index
    %c0_66 = arith.constant 0 : index
    %c0_67 = arith.constant 0 : index
    %207 = vector.load %arg10[%206, %c0_66, %c0_67] : memref<8x8x256xf32, #tpu.memory_space<vmem>>, vector<1x8x256xf32>
    %208 = vector.shape_cast %207 : vector<1x8x256xf32> to vector<8x256xf32>
    %209 = arith.truncf %181 : vector<8x64xf32> to vector<8x64xbf16>
    %c0_68 = arith.constant 0 : index
    %c0_69 = arith.constant 0 : index
    %210 = vector.load %arg3[%c0_68, %c0_69] : memref<64x256xbf16, #tpu.memory_space<vmem>>, vector<64x256xbf16>
    %cst_70 = arith.constant dense<0.000000e+00> : vector<8x256xf32>
    %211 = tpu.matmul %209, %210, %cst_70 {dimension_numbers = #tpu.dot_dimension_numbers<[1], [0], [0], [1], [0, 0, 1, 1], [], []>} : vector<8x64xbf16>, vector<64x256xbf16>, vector<8x256xf32> -> vector<8x256xf32>
    %212 = arith.addf %208, %211 : vector<8x256xf32>
    %213 = vector.extract_strided_slice %212 {offsets = [0, 0], sizes = [8, 192], strides = [1, 1]} : vector<8x256xf32> to vector<8x192xf32>
    %214 = arith.negf %213 : vector<8x192xf32>
    %215 = math.exp %214 : vector<8x192xf32>
    %cst_71 = arith.constant 1.000000e+00 : f32
    %216 = vector.broadcast %cst_71 : f32 to vector<8x192xf32>
    %217 = arith.addf %216, %215 : vector<8x192xf32>
    %218 = arith.divf %216, %217 : vector<8x192xf32>
    %219 = vector.extract_strided_slice %218 {offsets = [0, 0], sizes = [8, 64], strides = [1, 1]} : vector<8x192xf32> to vector<8x64xf32>
    %220 = vector.extract_strided_slice %218 {offsets = [0, 64], sizes = [8, 64], strides = [1, 1]} : vector<8x192xf32> to vector<8x64xf32>
    %221 = vector.extract_strided_slice %218 {offsets = [0, 128], sizes = [8, 64], strides = [1, 1]} : vector<8x192xf32> to vector<8x64xf32>
    %222 = vector.extract_strided_slice %212 {offsets = [0, 192], sizes = [8, 64], strides = [1, 1]} : vector<8x256xf32> to vector<8x64xf32>
    %223 = math.tanh %222 : vector<8x64xf32>
    %224 = arith.mulf %220, %179 : vector<8x64xf32>
    %225 = arith.mulf %219, %223 : vector<8x64xf32>
    %226 = arith.addf %224, %225 : vector<8x64xf32>
    %227 = math.tanh %226 : vector<8x64xf32>
    %228 = arith.mulf %221, %227 : vector<8x64xf32>
    %229 = arith.truncf %228 : vector<8x64xf32> to vector<8x64xbf16>
    %c0_72 = arith.constant 0 : index
    %c0_73 = arith.constant 0 : index
    %230 = vector.load %arg4[%c0_72, %c0_73] : memref<64x256xbf16, #tpu.memory_space<vmem>>, vector<64x256xbf16>
    %cst_74 = arith.constant dense<0.000000e+00> : vector<8x256xf32>
    %231 = tpu.matmul %229, %230, %cst_74 {dimension_numbers = #tpu.dot_dimension_numbers<[1], [0], [0], [1], [0, 0, 1, 1], [], []>} : vector<8x64xbf16>, vector<64x256xbf16>, vector<8x256xf32> -> vector<8x256xf32>
    %232 = arith.addf %231, %205 : vector<8x256xf32>
    %233 = arith.addf %232, %13 : vector<8x256xf32>
    %234 = vector.extract_strided_slice %233 {offsets = [0, 0], sizes = [8, 192], strides = [1, 1]} : vector<8x256xf32> to vector<8x192xf32>
    %235 = arith.negf %234 : vector<8x192xf32>
    %236 = math.exp %235 : vector<8x192xf32>
    %cst_75 = arith.constant 1.000000e+00 : f32
    %237 = vector.broadcast %cst_75 : f32 to vector<8x192xf32>
    %238 = arith.addf %237, %236 : vector<8x192xf32>
    %239 = arith.divf %237, %238 : vector<8x192xf32>
    %240 = vector.extract_strided_slice %239 {offsets = [0, 0], sizes = [8, 64], strides = [1, 1]} : vector<8x192xf32> to vector<8x64xf32>
    %241 = vector.extract_strided_slice %239 {offsets = [0, 64], sizes = [8, 64], strides = [1, 1]} : vector<8x192xf32> to vector<8x64xf32>
    %242 = vector.extract_strided_slice %239 {offsets = [0, 128], sizes = [8, 64], strides = [1, 1]} : vector<8x192xf32> to vector<8x64xf32>
    %243 = vector.extract_strided_slice %233 {offsets = [0, 192], sizes = [8, 64], strides = [1, 1]} : vector<8x256xf32> to vector<8x64xf32>
    %244 = math.tanh %243 : vector<8x64xf32>
    %245 = arith.mulf %241, %200 : vector<8x64xf32>
    %246 = arith.mulf %240, %244 : vector<8x64xf32>
    %247 = arith.addf %245, %246 : vector<8x64xf32>
    %248 = math.tanh %247 : vector<8x64xf32>
    %249 = arith.mulf %242, %248 : vector<8x64xf32>
    %c5_i32 = arith.constant 5 : i32
    %250 = arith.truncf %249 : vector<8x64xf32> to vector<8x64xbf16>
    %c0_76 = arith.constant 0 : index
    %c0_77 = arith.constant 0 : index
    %251 = vector.load %arg5[%c0_76, %c0_77] : memref<64x256xbf16, #tpu.memory_space<vmem>>, vector<64x256xbf16>
    %cst_78 = arith.constant dense<0.000000e+00> : vector<8x256xf32>
    %252 = tpu.matmul %250, %251, %cst_78 {dimension_numbers = #tpu.dot_dimension_numbers<[1], [0], [0], [1], [0, 0, 1, 1], [], []>} : vector<8x64xbf16>, vector<64x256xbf16>, vector<8x256xf32> -> vector<8x256xf32>
    %253 = arith.index_cast %c5_i32 : i32 to index
    %c0_79 = arith.constant 0 : index
    %c0_80 = arith.constant 0 : index
    %254 = vector.load %arg10[%253, %c0_79, %c0_80] : memref<8x8x256xf32, #tpu.memory_space<vmem>>, vector<1x8x256xf32>
    %255 = vector.shape_cast %254 : vector<1x8x256xf32> to vector<8x256xf32>
    %256 = arith.truncf %228 : vector<8x64xf32> to vector<8x64xbf16>
    %c0_81 = arith.constant 0 : index
    %c0_82 = arith.constant 0 : index
    %257 = vector.load %arg3[%c0_81, %c0_82] : memref<64x256xbf16, #tpu.memory_space<vmem>>, vector<64x256xbf16>
    %cst_83 = arith.constant dense<0.000000e+00> : vector<8x256xf32>
    %258 = tpu.matmul %256, %257, %cst_83 {dimension_numbers = #tpu.dot_dimension_numbers<[1], [0], [0], [1], [0, 0, 1, 1], [], []>} : vector<8x64xbf16>, vector<64x256xbf16>, vector<8x256xf32> -> vector<8x256xf32>
    %259 = arith.addf %255, %258 : vector<8x256xf32>
    %260 = vector.extract_strided_slice %259 {offsets = [0, 0], sizes = [8, 192], strides = [1, 1]} : vector<8x256xf32> to vector<8x192xf32>
    %261 = arith.negf %260 : vector<8x192xf32>
    %262 = math.exp %261 : vector<8x192xf32>
    %cst_84 = arith.constant 1.000000e+00 : f32
    %263 = vector.broadcast %cst_84 : f32 to vector<8x192xf32>
    %264 = arith.addf %263, %262 : vector<8x192xf32>
    %265 = arith.divf %263, %264 : vector<8x192xf32>
    %266 = vector.extract_strided_slice %265 {offsets = [0, 0], sizes = [8, 64], strides = [1, 1]} : vector<8x192xf32> to vector<8x64xf32>
    %267 = vector.extract_strided_slice %265 {offsets = [0, 64], sizes = [8, 64], strides = [1, 1]} : vector<8x192xf32> to vector<8x64xf32>
    %268 = vector.extract_strided_slice %265 {offsets = [0, 128], sizes = [8, 64], strides = [1, 1]} : vector<8x192xf32> to vector<8x64xf32>
    %269 = vector.extract_strided_slice %259 {offsets = [0, 192], sizes = [8, 64], strides = [1, 1]} : vector<8x256xf32> to vector<8x64xf32>
    %270 = math.tanh %269 : vector<8x64xf32>
    %271 = arith.mulf %267, %226 : vector<8x64xf32>
    %272 = arith.mulf %266, %270 : vector<8x64xf32>
    %273 = arith.addf %271, %272 : vector<8x64xf32>
    %274 = math.tanh %273 : vector<8x64xf32>
    %275 = arith.mulf %268, %274 : vector<8x64xf32>
    %276 = arith.truncf %275 : vector<8x64xf32> to vector<8x64xbf16>
    %c0_85 = arith.constant 0 : index
    %c0_86 = arith.constant 0 : index
    %277 = vector.load %arg4[%c0_85, %c0_86] : memref<64x256xbf16, #tpu.memory_space<vmem>>, vector<64x256xbf16>
    %cst_87 = arith.constant dense<0.000000e+00> : vector<8x256xf32>
    %278 = tpu.matmul %276, %277, %cst_87 {dimension_numbers = #tpu.dot_dimension_numbers<[1], [0], [0], [1], [0, 0, 1, 1], [], []>} : vector<8x64xbf16>, vector<64x256xbf16>, vector<8x256xf32> -> vector<8x256xf32>
    %279 = arith.addf %278, %252 : vector<8x256xf32>
    %280 = arith.addf %279, %13 : vector<8x256xf32>
    %281 = vector.extract_strided_slice %280 {offsets = [0, 0], sizes = [8, 192], strides = [1, 1]} : vector<8x256xf32> to vector<8x192xf32>
    %282 = arith.negf %281 : vector<8x192xf32>
    %283 = math.exp %282 : vector<8x192xf32>
    %cst_88 = arith.constant 1.000000e+00 : f32
    %284 = vector.broadcast %cst_88 : f32 to vector<8x192xf32>
    %285 = arith.addf %284, %283 : vector<8x192xf32>
    %286 = arith.divf %284, %285 : vector<8x192xf32>
    %287 = vector.extract_strided_slice %286 {offsets = [0, 0], sizes = [8, 64], strides = [1, 1]} : vector<8x192xf32> to vector<8x64xf32>
    %288 = vector.extract_strided_slice %286 {offsets = [0, 64], sizes = [8, 64], strides = [1, 1]} : vector<8x192xf32> to vector<8x64xf32>
    %289 = vector.extract_strided_slice %286 {offsets = [0, 128], sizes = [8, 64], strides = [1, 1]} : vector<8x192xf32> to vector<8x64xf32>
    %290 = vector.extract_strided_slice %280 {offsets = [0, 192], sizes = [8, 64], strides = [1, 1]} : vector<8x256xf32> to vector<8x64xf32>
    %291 = math.tanh %290 : vector<8x64xf32>
    %292 = arith.mulf %288, %247 : vector<8x64xf32>
    %293 = arith.mulf %287, %291 : vector<8x64xf32>
    %294 = arith.addf %292, %293 : vector<8x64xf32>
    %295 = math.tanh %294 : vector<8x64xf32>
    %296 = arith.mulf %289, %295 : vector<8x64xf32>
    %c6_i32 = arith.constant 6 : i32
    %297 = arith.truncf %296 : vector<8x64xf32> to vector<8x64xbf16>
    %c0_89 = arith.constant 0 : index
    %c0_90 = arith.constant 0 : index
    %298 = vector.load %arg5[%c0_89, %c0_90] : memref<64x256xbf16, #tpu.memory_space<vmem>>, vector<64x256xbf16>
    %cst_91 = arith.constant dense<0.000000e+00> : vector<8x256xf32>
    %299 = tpu.matmul %297, %298, %cst_91 {dimension_numbers = #tpu.dot_dimension_numbers<[1], [0], [0], [1], [0, 0, 1, 1], [], []>} : vector<8x64xbf16>, vector<64x256xbf16>, vector<8x256xf32> -> vector<8x256xf32>
    %300 = arith.index_cast %c6_i32 : i32 to index
    %c0_92 = arith.constant 0 : index
    %c0_93 = arith.constant 0 : index
    %301 = vector.load %arg10[%300, %c0_92, %c0_93] : memref<8x8x256xf32, #tpu.memory_space<vmem>>, vector<1x8x256xf32>
    %302 = vector.shape_cast %301 : vector<1x8x256xf32> to vector<8x256xf32>
    %303 = arith.truncf %275 : vector<8x64xf32> to vector<8x64xbf16>
    %c0_94 = arith.constant 0 : index
    %c0_95 = arith.constant 0 : index
    %304 = vector.load %arg3[%c0_94, %c0_95] : memref<64x256xbf16, #tpu.memory_space<vmem>>, vector<64x256xbf16>
    %cst_96 = arith.constant dense<0.000000e+00> : vector<8x256xf32>
    %305 = tpu.matmul %303, %304, %cst_96 {dimension_numbers = #tpu.dot_dimension_numbers<[1], [0], [0], [1], [0, 0, 1, 1], [], []>} : vector<8x64xbf16>, vector<64x256xbf16>, vector<8x256xf32> -> vector<8x256xf32>
    %306 = arith.addf %302, %305 : vector<8x256xf32>
    %307 = vector.extract_strided_slice %306 {offsets = [0, 0], sizes = [8, 192], strides = [1, 1]} : vector<8x256xf32> to vector<8x192xf32>
    %308 = arith.negf %307 : vector<8x192xf32>
    %309 = math.exp %308 : vector<8x192xf32>
    %cst_97 = arith.constant 1.000000e+00 : f32
    %310 = vector.broadcast %cst_97 : f32 to vector<8x192xf32>
    %311 = arith.addf %310, %309 : vector<8x192xf32>
    %312 = arith.divf %310, %311 : vector<8x192xf32>
    %313 = vector.extract_strided_slice %312 {offsets = [0, 0], sizes = [8, 64], strides = [1, 1]} : vector<8x192xf32> to vector<8x64xf32>
    %314 = vector.extract_strided_slice %312 {offsets = [0, 64], sizes = [8, 64], strides = [1, 1]} : vector<8x192xf32> to vector<8x64xf32>
    %315 = vector.extract_strided_slice %312 {offsets = [0, 128], sizes = [8, 64], strides = [1, 1]} : vector<8x192xf32> to vector<8x64xf32>
    %316 = vector.extract_strided_slice %306 {offsets = [0, 192], sizes = [8, 64], strides = [1, 1]} : vector<8x256xf32> to vector<8x64xf32>
    %317 = math.tanh %316 : vector<8x64xf32>
    %318 = arith.mulf %314, %273 : vector<8x64xf32>
    %319 = arith.mulf %313, %317 : vector<8x64xf32>
    %320 = arith.addf %318, %319 : vector<8x64xf32>
    %321 = math.tanh %320 : vector<8x64xf32>
    %322 = arith.mulf %315, %321 : vector<8x64xf32>
    %323 = arith.truncf %322 : vector<8x64xf32> to vector<8x64xbf16>
    %c0_98 = arith.constant 0 : index
    %c0_99 = arith.constant 0 : index
    %324 = vector.load %arg4[%c0_98, %c0_99] : memref<64x256xbf16, #tpu.memory_space<vmem>>, vector<64x256xbf16>
    %cst_100 = arith.constant dense<0.000000e+00> : vector<8x256xf32>
    %325 = tpu.matmul %323, %324, %cst_100 {dimension_numbers = #tpu.dot_dimension_numbers<[1], [0], [0], [1], [0, 0, 1, 1], [], []>} : vector<8x64xbf16>, vector<64x256xbf16>, vector<8x256xf32> -> vector<8x256xf32>
    %326 = arith.addf %325, %299 : vector<8x256xf32>
    %327 = arith.addf %326, %13 : vector<8x256xf32>
    %328 = vector.extract_strided_slice %327 {offsets = [0, 0], sizes = [8, 192], strides = [1, 1]} : vector<8x256xf32> to vector<8x192xf32>
    %329 = arith.negf %328 : vector<8x192xf32>
    %330 = math.exp %329 : vector<8x192xf32>
    %cst_101 = arith.constant 1.000000e+00 : f32
    %331 = vector.broadcast %cst_101 : f32 to vector<8x192xf32>
    %332 = arith.addf %331, %330 : vector<8x192xf32>
    %333 = arith.divf %331, %332 : vector<8x192xf32>
    %334 = vector.extract_strided_slice %333 {offsets = [0, 0], sizes = [8, 64], strides = [1, 1]} : vector<8x192xf32> to vector<8x64xf32>
    %335 = vector.extract_strided_slice %333 {offsets = [0, 64], sizes = [8, 64], strides = [1, 1]} : vector<8x192xf32> to vector<8x64xf32>
    %336 = vector.extract_strided_slice %333 {offsets = [0, 128], sizes = [8, 64], strides = [1, 1]} : vector<8x192xf32> to vector<8x64xf32>
    %337 = vector.extract_strided_slice %327 {offsets = [0, 192], sizes = [8, 64], strides = [1, 1]} : vector<8x256xf32> to vector<8x64xf32>
    %338 = math.tanh %337 : vector<8x64xf32>
    %339 = arith.mulf %335, %294 : vector<8x64xf32>
    %340 = arith.mulf %334, %338 : vector<8x64xf32>
    %341 = arith.addf %339, %340 : vector<8x64xf32>
    %342 = math.tanh %341 : vector<8x64xf32>
    %343 = arith.mulf %336, %342 : vector<8x64xf32>
    %c7_i32 = arith.constant 7 : i32
    %344 = arith.truncf %343 : vector<8x64xf32> to vector<8x64xbf16>
    %c0_102 = arith.constant 0 : index
    %c0_103 = arith.constant 0 : index
    %345 = vector.load %arg5[%c0_102, %c0_103] : memref<64x256xbf16, #tpu.memory_space<vmem>>, vector<64x256xbf16>
    %cst_104 = arith.constant dense<0.000000e+00> : vector<8x256xf32>
    %346 = tpu.matmul %344, %345, %cst_104 {dimension_numbers = #tpu.dot_dimension_numbers<[1], [0], [0], [1], [0, 0, 1, 1], [], []>} : vector<8x64xbf16>, vector<64x256xbf16>, vector<8x256xf32> -> vector<8x256xf32>
    %347 = arith.index_cast %c7_i32 : i32 to index
    %c0_105 = arith.constant 0 : index
    %c0_106 = arith.constant 0 : index
    %348 = vector.load %arg10[%347, %c0_105, %c0_106] : memref<8x8x256xf32, #tpu.memory_space<vmem>>, vector<1x8x256xf32>
    %349 = vector.shape_cast %348 : vector<1x8x256xf32> to vector<8x256xf32>
    %350 = arith.truncf %322 : vector<8x64xf32> to vector<8x64xbf16>
    %c0_107 = arith.constant 0 : index
    %c0_108 = arith.constant 0 : index
    %351 = vector.load %arg3[%c0_107, %c0_108] : memref<64x256xbf16, #tpu.memory_space<vmem>>, vector<64x256xbf16>
    %cst_109 = arith.constant dense<0.000000e+00> : vector<8x256xf32>
    %352 = tpu.matmul %350, %351, %cst_109 {dimension_numbers = #tpu.dot_dimension_numbers<[1], [0], [0], [1], [0, 0, 1, 1], [], []>} : vector<8x64xbf16>, vector<64x256xbf16>, vector<8x256xf32> -> vector<8x256xf32>
    %353 = arith.addf %349, %352 : vector<8x256xf32>
    %354 = vector.extract_strided_slice %353 {offsets = [0, 0], sizes = [8, 192], strides = [1, 1]} : vector<8x256xf32> to vector<8x192xf32>
    %355 = arith.negf %354 : vector<8x192xf32>
    %356 = math.exp %355 : vector<8x192xf32>
    %cst_110 = arith.constant 1.000000e+00 : f32
    %357 = vector.broadcast %cst_110 : f32 to vector<8x192xf32>
    %358 = arith.addf %357, %356 : vector<8x192xf32>
    %359 = arith.divf %357, %358 : vector<8x192xf32>
    %360 = vector.extract_strided_slice %359 {offsets = [0, 0], sizes = [8, 64], strides = [1, 1]} : vector<8x192xf32> to vector<8x64xf32>
    %361 = vector.extract_strided_slice %359 {offsets = [0, 64], sizes = [8, 64], strides = [1, 1]} : vector<8x192xf32> to vector<8x64xf32>
    %362 = vector.extract_strided_slice %359 {offsets = [0, 128], sizes = [8, 64], strides = [1, 1]} : vector<8x192xf32> to vector<8x64xf32>
    %363 = vector.extract_strided_slice %353 {offsets = [0, 192], sizes = [8, 64], strides = [1, 1]} : vector<8x256xf32> to vector<8x64xf32>
    %364 = math.tanh %363 : vector<8x64xf32>
    %365 = arith.mulf %361, %320 : vector<8x64xf32>
    %366 = arith.mulf %360, %364 : vector<8x64xf32>
    %367 = arith.addf %365, %366 : vector<8x64xf32>
    %368 = math.tanh %367 : vector<8x64xf32>
    %369 = arith.mulf %362, %368 : vector<8x64xf32>
    %370 = arith.truncf %369 : vector<8x64xf32> to vector<8x64xbf16>
    %c0_111 = arith.constant 0 : index
    %c0_112 = arith.constant 0 : index
    %371 = vector.load %arg4[%c0_111, %c0_112] : memref<64x256xbf16, #tpu.memory_space<vmem>>, vector<64x256xbf16>
    %cst_113 = arith.constant dense<0.000000e+00> : vector<8x256xf32>
    %372 = tpu.matmul %370, %371, %cst_113 {dimension_numbers = #tpu.dot_dimension_numbers<[1], [0], [0], [1], [0, 0, 1, 1], [], []>} : vector<8x64xbf16>, vector<64x256xbf16>, vector<8x256xf32> -> vector<8x256xf32>
    %373 = arith.addf %372, %346 : vector<8x256xf32>
    %374 = arith.addf %373, %13 : vector<8x256xf32>
    %375 = vector.extract_strided_slice %374 {offsets = [0, 0], sizes = [8, 192], strides = [1, 1]} : vector<8x256xf32> to vector<8x192xf32>
    %376 = arith.negf %375 : vector<8x192xf32>
    %377 = math.exp %376 : vector<8x192xf32>
    %cst_114 = arith.constant 1.000000e+00 : f32
    %378 = vector.broadcast %cst_114 : f32 to vector<8x192xf32>
    %379 = arith.addf %378, %377 : vector<8x192xf32>
    %380 = arith.divf %378, %379 : vector<8x192xf32>
    %381 = vector.extract_strided_slice %380 {offsets = [0, 0], sizes = [8, 64], strides = [1, 1]} : vector<8x192xf32> to vector<8x64xf32>
    %382 = vector.extract_strided_slice %380 {offsets = [0, 64], sizes = [8, 64], strides = [1, 1]} : vector<8x192xf32> to vector<8x64xf32>
    %383 = vector.extract_strided_slice %380 {offsets = [0, 128], sizes = [8, 64], strides = [1, 1]} : vector<8x192xf32> to vector<8x64xf32>
    %384 = vector.extract_strided_slice %374 {offsets = [0, 192], sizes = [8, 64], strides = [1, 1]} : vector<8x256xf32> to vector<8x64xf32>
    %385 = math.tanh %384 : vector<8x64xf32>
    %386 = arith.mulf %382, %341 : vector<8x64xf32>
    %387 = arith.mulf %381, %385 : vector<8x64xf32>
    %388 = arith.addf %386, %387 : vector<8x64xf32>
    %389 = math.tanh %388 : vector<8x64xf32>
    %390 = arith.mulf %383, %389 : vector<8x64xf32>
    %c8_i32 = arith.constant 8 : i32
    %c0_115 = arith.constant 0 : index
    %c0_116 = arith.constant 0 : index
    %391 = vector.load %arg7[%c0_115, %c0_116] : memref<1x64xf32, #tpu.memory_space<vmem>>, vector<1x64xf32>
    %392 = vector.broadcast %391 : vector<1x64xf32> to vector<8x64xf32>
    %393 = arith.mulf %390, %392 : vector<8x64xf32>
    %cst_117 = arith.constant dense<0.000000e+00> : vector<8xf32>
    %394 = vector.multi_reduction <add>, %393, %cst_117 [1] : vector<8x64xf32> to vector<8xf32>
    %395 = vector.shape_cast %394 : vector<8xf32> to vector<8x1xf32>
    %c0_118 = arith.constant 0 : index
    %c0_119 = arith.constant 0 : index
    %396 = vector.load %arg8[%c0_118, %c0_119] : memref<1x1xf32, #tpu.memory_space<vmem>>, vector<1x1xf32>
    %397 = vector.broadcast %396 : vector<1x1xf32> to vector<8x1xf32>
    %398 = arith.addf %395, %397 : vector<8x1xf32>
    %c0_120 = arith.constant 0 : index
    %c0_121 = arith.constant 0 : index
    %399 = vector.load %arg9[%c0_120, %c0_121] : memref<8x1xf32, #tpu.memory_space<vmem>>, vector<8x1xf32>
    tpu.vector_store %arg9[%c0_120, %c0_121], %398 {strides = array<i32>} : memref<8x1xf32, #tpu.memory_space<vmem>>, vector<8x1xf32>,
    return
  }
}

</mosaic_0001>

<bundles_post_ra>
// kernel: tpu_custom_call.1
= control target key start
LH: loop header
LB: loop body
LE: loop exit
PB: predicated region body
PF: predicated region fallthrough
CT: control target
= control target key end

     0   :  { %s2993_s0 = inlined_call_operand.vmem [shape: f32[8,8,1], index: 0, kind: input, shape index: {}]   ;;  %s2994_s1 = inlined_call_operand.vmem [shape: f32[1,256], index: 1, kind: input, shape index: {}]   ;;  %s2995_s2 = inlined_call_operand.vmem [shape: f32[1,256], index: 2, kind: input, shape index: {}]   ;;  %s2996_s3 = inlined_call_operand.vmem [shape: bf16[64,256], index: 3, kind: input, shape index: {}]   ;;  %s2997_s4 = inlined_call_operand.hbm [shape: bf16[64,256], index: 4, kind: input, shape index: {}]   ;;  %s2998_s5 = inlined_call_operand.hbm [shape: bf16[64,256], index: 5, kind: input, shape index: {}]   ;;  %s2999_s6 = inlined_call_operand.vmem [shape: f32[1,256], index: 6, kind: input, shape index: {}]   ;;  %s3000_s7 = inlined_call_operand.vmem [shape: f32[1,64], index: 7, kind: input, shape index: {}]   ;;  %s3001_s8 = inlined_call_operand.<no memory space> [shape: f32[1,1], index: 8, kind: input, shape index: {}]   ;;  %s3002_s9 = inlined_call_operand.vmem [shape: f32[8,1], index: 9, kind: output, shape index: {}]  }
   0x1   :  { %v14_v0 = vstv %s3001_s8 }
   0x2   :  { %15 = vst [vmem:[#allocation3] sm:$0x1] %v14_v0 }
   0x3   :  { %16 = vsyncpa [#allocation5], 0 }
   0x4   :  { %17 = vsyncpa [#allocation7], 0  ;;  %s2337_s11 = smov [#allocation4]   ;;  %s2289_s15 = scalar_lea.hbm %s2997_s4, 1024 }
   0x5   :  { %s31_s12 = sshll.u32 %s2337_s11, 4  ;;  %p2290_p0 = scmp.ne.s32.totalorder %s2997_s4, %s2289_s15  ;;  %s32_s12 = int_to_ptr.vmem [resolvable:$true] %s31_s12 }
   0x6   :  { %p2293_p1 = scmp.lt.u32.totalorder %s2289_s15, %s2997_s4 }
   0x8   :  { %p2295_p2 = pnand %p2293_p1, %p2290_p0 }
   0xa   :  { %2298 = shalt.err (!%p2295_p2)
}
   0xb   :  { %s2299_s8 = scalar_lea.vmem %s32_s12, 1024  ;;  %p2304_p4 = scmp.lt.s32.totalorder %s32_s12, %s32_s12 }
   0xc   :  { %p2300_p3 = scmp.ne.s32.totalorder %s32_s12, %s2299_s8  ;;  %p2305_p5 = scmp.lt.s32.totalorder %s2299_s8, %s2299_s8 }
   0xe   :  { %p2306_p6 = por %p2305_p5, %p2304_p4 }
  0x10   :  { %p2307_p7 = pnand %p2306_p6, %p2300_p3 }
  0x12   :  { %2310 = shalt.err (!%p2307_p7)
}
  0x13   :  { %s2338_s20 = smov 128   ;;  %s2339_s21 = smov 8  }
  0x14   :  { %37 = dma.hbm_to_vmem [thread:$0]  %s2997_s4, 1024, %s32_s12, [#allocation5], %s2338_s20, %s2338_s20, %s2339_s21  }
  0x15   :  { %s2340_s24 = smov [#allocation6]   ;;  %s2311_s28 = scalar_lea.hbm %s2998_s5, 1024 }
  0x16   :  { %s43_s25 = sshll.u32 %s2340_s24, 4  ;;  %p2312_p8 = scmp.ne.s32.totalorder %s2998_s5, %s2311_s28  ;;  %s44_s25 = int_to_ptr.vmem [resolvable:$true] %s43_s25 }
  0x17   :  { %p2315_p9 = scmp.lt.u32.totalorder %s2311_s28, %s2998_s5 }
  0x19   :  { %p2317_p10 = pnand %p2315_p9, %p2312_p8 }
  0x1b   :  { %2320 = shalt.err (!%p2317_p10)
}
  0x1c   :  { %s2321_s13 = scalar_lea.vmem %s44_s25, 1024  ;;  %p2326_p12 = scmp.lt.s32.totalorder %s44_s25, %s44_s25 }
  0x1d   :  { %p2322_p11 = scmp.ne.s32.totalorder %s44_s25, %s2321_s13  ;;  %p2327_p13 = scmp.lt.s32.totalorder %s2321_s13, %s2321_s13 }
  0x1f   :  { %p2328_p0 = por %p2327_p13, %p2326_p12 }
  0x21   :  { %p2329_p1 = pnand %p2328_p0, %p2322_p11 }
  0x23   :  { %2332 = shalt.err (!%p2329_p1)
}
  0x24   :  { %49 = dma.hbm_to_vmem [thread:$0]  %s2998_s5, 1024, %s44_s25, [#allocation7], %s2338_s20, %s2338_s20, %s2339_s21  }
  0x25   :  { %2333 = dma.done.wait [#allocation5], 1024  }
  0x26   :  { %2334 = vsyncadd [#allocation5], 4294966272 }
  0x27   :  { %2335 = dma.done.wait [#allocation7], 1024  }
  0x28   :  { %2336 = vsyncadd [#allocation7], 4294966272  ;;  %v2341_v1 = vmov 0   ;;  %v2427_v2 = vld [vmem:[%s2996_s3 + $0x4] ss:$8 sps:$4 sm:$0xff]   ;;  %v113_v11 = vlaneseq  ;;  %vm243_vm0 = vcmask 523264  }
  0x29   :  { %370 = vmatprep.mubr.bf16.mxu1 %v2341_v1  ;;  %2035 = vset.pattern.permute.xlu0 %v2341_v1  ;;  %v2432_v3 = vld [vmem:[%s2996_s3] ss:$8 sps:$4 sm:$0xff]   ;;  %v2438_v4 = vld [vmem:[%s2996_s3 + $0x14] ss:$8 sps:$4 sm:$0xff]   ;;  %v2444_v5 = vld [vmem:[%s2996_s3 + $0x10] ss:$8 sps:$4 sm:$0xff]  }
  0x2a   :  { %279 = vmatprep.mubr.bf16.mxu0 %v2341_v1  ;;  %2036 = vset.pattern.permute.xlu1 %v2341_v1  ;;  %v2450_v6 = vld [vmem:[%s2996_s3 + $0x24] ss:$8 sps:$4 sm:$0xff]   ;;  %v2455_v7 = vld [vmem:[%s2996_s3 + $0x20] ss:$8 sps:$4 sm:$0xff]   ;;  %v2463_v9 = vld [vmem:[%s2996_s3 + $0x34] ss:$8 sps:$4 sm:$0xff]  }
  0x2b   :  { %338 = vmatprep.subr.bf16.mxu1 %v2427_v2  ;;  %v63_v8 = vld [vmem:[%s2993_s0] sm:$0xff]  ;;  %v2471_v10 = vld [vmem:[%s2996_s3 + $0x30] ss:$8 sps:$4 sm:$0xff]   ;;  %v114_v12 = vshrl.u32 %v113_v11, 7  ;;  %v64_v27 = vld [vmem:[%s2993_s0 + $0x8] sm:$0xff]  ;;  %vm1941_vm1 = vcmask 7168  }
  0x2c   :  { %339 = vmatpush1.bf16.msra.mxu1 %v2432_v3  ;;  %74 = vperm.xlu0 %2035, %v63_v8   ;;  %v71_v14 = vld [vmem:[%s2994_s1] sm:$0x3]  ;;  %s2342_s1 = smov 64   ;;  %v2511_v40 = vld [vmem:[#allocation6 + $0x4] ss:$8 sps:$4 sm:$0xff]  }
  0x2d   :  { %340 = vmatprep.subr.bf16.mxu1 %v2438_v4  ;;  %v2477_v13 = vsub.s32 1, %v114_v12  ;;  %v139_v17 = vld [vmem:[%s2995_s2] sm:$0x3]  ;;  %v2500_v28 = vsub.s32 0, %v114_v12  ;;  %247 = vmatprep.subr.bf16.mxu0 %v2511_v40  ;;  %v2520_v43 = vld [vmem:[#allocation6 + $0x10] ss:$8 sps:$4 sm:$0xff]  }
  0x2e   :  { %v2513_v41 = vld [vmem:[#allocation6] ss:$8 sps:$4 sm:$0xff]   ;;  %v2515_v42 = vld [vmem:[#allocation6 + $0x14] ss:$8 sps:$4 sm:$0xff]   ;;  %v2524_v44 = vld [vmem:[#allocation6 + $0x24] ss:$8 sps:$4 sm:$0xff]  }
  0x2f   :  { %v2483_v15 = vrot.slane %v71_v14, %v2477_v13  ;;  %v2490_v19 = vrot.slane %v139_v17, %v2477_v13  ;;  %v2503_v29 = vrot.slane %v71_v14, %v2500_v28  ;;  %v2507_v31 = vrot.slane %v139_v17, %v2500_v28  ;;  %248 = vmatpush1.bf16.msra.mxu0 %v2513_v41  ;;  %v2528_v45 = vld [vmem:[#allocation6 + $0x20] ss:$8 sps:$4 sm:$0xff]   ;;  %v2532_v46 = vld [vmem:[#allocation6 + $0x34] ss:$8 sps:$4 sm:$0xff]   ;;  %v2536_v47 = vld [vmem:[#allocation6 + $0x30] ss:$8 sps:$4 sm:$0xff]  }
  0x30   :  { %341 = vmatpush1.bf16.msra.mxu1 %v2444_v5  ;;  %249 = vmatprep.subr.bf16.mxu0 %v2515_v42  ;;  %v2540_v48 = vld [vmem:[#allocation4 + $0x4] ss:$8 sps:$4 sm:$0xff]   ;;  %v2544_v49 = vld [vmem:[#allocation4] ss:$8 sps:$4 sm:$0xff]   ;;  %v2548_v50 = vld [vmem:[#allocation4 + $0x14] ss:$8 sps:$4 sm:$0xff]  }
  0x31   :  { %342 = vmatprep.subr.bf16.mxu1 %v2450_v6  ;;  %v2553_v51 = vld [vmem:[#allocation4 + $0x10] ss:$8 sps:$4 sm:$0xff]   ;;  %v2557_v52 = vld [vmem:[#allocation4 + $0x24] ss:$8 sps:$4 sm:$0xff]   ;;  %v2560_v53 = vld [vmem:[#allocation4 + $0x20] ss:$8 sps:$4 sm:$0xff]  }
  0x32   :  { %v2563_v54 = vld [vmem:[#allocation4 + $0x34] ss:$8 sps:$4 sm:$0xff]   ;;  %v2567_v56 = vld [vmem:[#allocation4 + $0x30] ss:$8 sps:$4 sm:$0xff]  }
  0x33   :  { %250 = vmatpush1.bf16.msra.mxu0 %v2520_v43 }
  0x34   :  { %343 = vmatpush1.bf16.msra.mxu1 %v2455_v7  ;;  %251 = vmatprep.subr.bf16.mxu0 %v2524_v44 }
  0x35   :  { %344 = vmatprep.subr.bf16.mxu1 %v2463_v9 }
  0x37   :  { %252 = vmatpush1.bf16.msra.mxu0 %v2528_v45 }
  0x38   :  { %345 = vmatpush1.bf16.msra.mxu1 %v2471_v10  ;;  %253 = vmatprep.subr.bf16.mxu0 %v2532_v46 }
  0x39   :  { %540 = vmatprep.subr.bf16.mxu1 %v2511_v40 }
  0x3b   :  { %371 = vmatmul.mubr.bf16.vlgmr.msra.gmra.mrb[0].mxu1 %v2341_v1  ;;  %254 = vmatpush1.bf16.msra.mxu0 %v2536_v47 }
  0x3c   :  { %572 = vmatprep.mubr.bf16.mxu1 %v2341_v1  ;;  %541 = vmatpush1.bf16.msra.mxu1 %v2513_v41 }
  0x3d   :  { %542 = vmatprep.subr.bf16.mxu1 %v2515_v42  ;;  %463 = vmatprep.subr.bf16.mxu0 %v2540_v48 }
  0x3e   :  { %280 = vmatmul.mubr.bf16.vlgmr.msra.gmra.mrb[0].mxu0 %v2341_v1 }
  0x3f   :  { %464 = vmatpush1.bf16.msra.mxu0 %v2544_v49  ;;  %495 = vmatprep.mubr.bf16.mxu0 %v2341_v1 }
  0x40   :  { %543 = vmatpush1.bf16.msra.mxu1 %v2520_v43  ;;  %465 = vmatprep.subr.bf16.mxu0 %v2548_v50 }
  0x41   :  { %544 = vmatprep.subr.bf16.mxu1 %v2524_v44 }
  0x43   :  { %466 = vmatpush1.bf16.msra.mxu0 %v2553_v51 }
  0x44   :  { %545 = vmatpush1.bf16.msra.mxu1 %v2528_v45  ;;  %467 = vmatprep.subr.bf16.mxu0 %v2557_v52 }
  0x45   :  { %546 = vmatprep.subr.bf16.mxu1 %v2532_v46 }
  0x47   :  { %468 = vmatpush1.bf16.msra.mxu0 %v2560_v53 }
  0x48   :  { %547 = vmatpush1.bf16.msra.mxu1 %v2536_v47  ;;  %469 = vmatprep.subr.bf16.mxu0 %v2563_v54 }
  0x49   :  { %661 = vmatprep.subr.bf16.mxu1 %v2540_v48 }
  0x4b   :  { %470 = vmatpush1.bf16.msra.mxu0 %v2567_v56 }
  0x4c   :  { %584 = vmatprep.subr.bf16.mxu0 %v2427_v2 }
  0xab   :  { %v75_v16 = vpop.permute.xlu0 %74 }
  0xac   :  { %v124_v18 = vmul.f32 %v2483_v15, %v75_v16  ;;  %v123_v30 = vmul.f32 %v2503_v29, %v75_v16 }
  0xae   :  { %v152_v20 = vadd.f32 %v2490_v19, %v124_v18  ;;  %v151_v32 = vadd.f32 %v2507_v31, %v123_v30  ;;  %v183_v18 = vld [vmem:[%s2999_s6] sm:$0x3] }
 0x10e   :  { %v372_v21 = vpop.f32.mrb[0].mxu1 }
 0x10f   :  { %v374_v22 = vpop.f32.mrb[1].mxu1  ;;  %v379_v33 = vadd.f32 %v372_v21, %v151_v32  ;;  %v2600_v21 = vrot.slane %v183_v18, %v2477_v13 }
 0x110   :  { %v2493_v23 = vadd.f32 %v374_v22, %v152_v20  ;;  %v376_v24 = vpop.f32.mrb[2].mxu1 }
 0x111   :  { %v377_v25 = vpop.f32.mrb[3].mxu1  ;;  %v1965_v34 = vmul.f32 -1.442695, %v379_v33  ;;  %v281_v63 = vpop.f32.mrb[0].mxu0 }
 0x112   :  { %2073 = vtanh.f32 %v2493_v23  ;;  %v1966_v60 = vmul.f32 -1.442695, %v2493_v23  ;;  %v283_v0 = vpop.f32.mrb[1].mxu0 }
 0x113   :  { %2075 = vpow2.f32 %v1965_v34  ;;  %v285_v8 = vpop.f32.mrb[2].mxu0 }
 0x114   :  { %v286_v11 = vpop.f32.mrb[3].mxu0 }
 0x11c   :  { %v2074_v26 = vpop.eup %2073 }
 0x11d   :  { %396 = vrot.lane.b32.xlu0 %v2074_v26, %s2342_s1  ;;  %v2076_v35 = vpop.eup %2075 }
 0x11e   :  { %v387_v36 = vadd.f32 1.0, %v2076_v35 }
 0x120   :  { %2077 = vrcp.f32 %v387_v36 }
 0x121   :  { %79 = vperm.xlu0 %2035, %v64_v27  }
 0x12a   :  { %v2078_v37 = vpop.eup %2077 }
 0x12b   :  { %v394_v55 = vmul.f32 0.0, %v2078_v37 }
 0x18f   :  { %v397_v38 = vpop.permute.xlu0 %396 }
 0x190   :  { %v399_v39 = vmul.f32 %v2078_v37, %v397_v38 }
 0x192   :  { %401 = vrot.lane.b32.xlu1 %v399_v39, %s2342_s1 }
 0x1a0   :  { %v80_v30 = vpop.permute.xlu0 %79 }
 0x1a1   :  { %v126_v32 = vmul.f32 %v2483_v15, %v80_v30 }
 0x1a3   :  { %v154_v36 = vadd.f32 %v2490_v19, %v126_v32 }
 0x204   :  { %v402_v57 = vpop.permute.xlu1 %401 }
 0x205   :  { %v2569_v58 = vadd.f32 %v402_v57, %v394_v55  ;;  %v2608_v55 = vrot.slane %v183_v18, %v2500_v28 }
 0x207   :  { %2079 = vtanh.f32 %v2569_v58 }
 0x208   :  { %2081 = vpow2.f32 %v1966_v60  ;;  %v125_v60 = vmul.f32 %v2503_v29, %v80_v30 }
 0x211   :  { %v2080_v59 = vpop.eup %2079 }
 0x212   :  { %407 = vrot.lane.b32.xlu1 %v2080_v59, %s2342_s1  ;;  %v2082_v61 = vpop.eup %2081 }
 0x213   :  { %v388_v62 = vadd.f32 1.0, %v2082_v61  ;;  %v153_v61 = vadd.f32 %v2507_v31, %v125_v60 }
 0x215   :  { %2083 = vrcp.f32 %v388_v62 }
 0x21f   :  { %v2084_v12 = vpop.eup %2083 }
 0x284   :  { %v408_v14 = vpop.permute.xlu1 %407 }
 0x285   :  { %v410_v16 = vmul.f32 %v2084_v12, %v408_v14 }
 0x287   :  { %v411_v17 = vpack.c.bf16 %v410_v16, %v410_v16 }
 0x289   :  { %1975 = vmatmul.mubr.msk.bf16.vlgmr.msra.gmra.mrb[4].mxu0 %vm243_vm0, %v411_v17 }
 0x28a   :  { %585 = vmatpush1.bf16.msra.mxu0 %v2432_v3  ;;  %616 = vmatprep.mubr.bf16.mxu0 %v2341_v1 }
 0x28b   :  { %586 = vmatprep.subr.bf16.mxu0 %v2438_v4 }
 0x28e   :  { %587 = vmatpush1.bf16.msra.mxu0 %v2444_v5 }
 0x28f   :  { %588 = vmatprep.subr.bf16.mxu0 %v2450_v6 }
 0x292   :  { %589 = vmatpush1.bf16.msra.mxu0 %v2455_v7 }
 0x293   :  { %590 = vmatprep.subr.bf16.mxu0 %v2463_v9 }
 0x296   :  { %591 = vmatpush1.bf16.msra.mxu0 %v2471_v10 }
 0x297   :  { %738 = vmatprep.subr.bf16.mxu0 %v2511_v40 }
 0x299   :  { %1979 = vmatmul.mubr.msk.bf16.vlgmr.msra.gmra.mrb[8].mxu0 %vm243_vm0, %v411_v17 }
 0x29a   :  { %739 = vmatpush1.bf16.msra.mxu0 %v2513_v41  ;;  %770 = vmatprep.mubr.bf16.mxu0 %v2341_v1 }
 0x29b   :  { %740 = vmatprep.subr.bf16.mxu0 %v2515_v42 }
 0x29e   :  { %741 = vmatpush1.bf16.msra.mxu0 %v2520_v43 }
 0x29f   :  { %742 = vmatprep.subr.bf16.mxu0 %v2524_v44 }
 0x2a2   :  { %743 = vmatpush1.bf16.msra.mxu0 %v2528_v45 }
 0x2a3   :  { %744 = vmatprep.subr.bf16.mxu0 %v2532_v46 }
 0x2a6   :  { %745 = vmatpush1.bf16.msra.mxu0 %v2536_v47 }
 0x2a7   :  { %859 = vmatprep.subr.bf16.mxu0 %v2540_v48 }
 0x35c   :  { %v497_v20 = vpop.f32.mrb[4].mxu0 }
 0x35d   :  { %v498_v22 = vadd.f32 %v497_v20, %v281_v63  ;;  %v499_v23 = vpop.f32.mrb[5].mxu0 }
 0x35e   :  { %v500_v24 = vadd.f32 %v499_v23, %v283_v0  ;;  %v501_v25 = vpop.f32.mrb[6].mxu0 }
 0x35f   :  { %v502_v26 = vpop.f32.mrb[7].mxu0  ;;  %v504_v57 = vadd.f32 %v498_v22, %v2608_v55 }
 0x360   :  { %v505_v27 = vadd.f32 %v500_v24, %v2600_v21 }
 0x361   :  { %v1976_v59 = vmul.f32 -1.442695, %v504_v57 }
 0x362   :  { %2085 = vtanh.f32 %v505_v27 }
 0x36c   :  { %v2086_v33 = vpop.eup %2085  ;;  %v618_v34 = vpop.f32.mrb[8].mxu0 }
 0x36d   :  { %v620_v35 = vpop.f32.mrb[9].mxu0  ;;  %521 = vrot.lane.b32.xlu1 %v2086_v33, %s2342_s1  ;;  %v625_v63 = vadd.f32 %v618_v34, %v153_v61  ;;  %v65_v34 = vld [vmem:[%s2993_s0 + $0x10] sm:$0xff] }
 0x36e   :  { %v622_v13 = vpop.f32.mrb[10].mxu0  ;;  %v626_v38 = vadd.f32 %v620_v35, %v154_v36  ;;  %v1977_v35 = vmul.f32 -1.442695, %v505_v27 }
 0x36f   :  { %v623_v37 = vpop.f32.mrb[11].mxu0  ;;  %v1980_v8 = vmul.f32 -1.442695, %v625_v63 }
 0x370   :  { %2087 = vtanh.f32 %v626_v38  ;;  %v1981_v37 = vmul.f32 -1.442695, %v626_v38 }
 0x371   :  { %2089 = vpow2.f32 %v1976_v59 }
 0x37a   :  { %v2088_v39 = vpop.eup %2087 }
 0x37b   :  { %642 = vrot.lane.b32.xlu0 %v2088_v39, %s2342_s1  ;;  %v2090_v62 = vpop.eup %2089 }
 0x37c   :  { %v512_v0 = vadd.f32 1.0, %v2090_v62 }
 0x37e   :  { %2091 = vrcp.f32 %v512_v0 }
 0x37f   :  { %2093 = vpow2.f32 %v1980_v8 }
 0x388   :  { %v2092_v11 = vpop.eup %2091 }
 0x389   :  { %v2094_v14 = vpop.eup %2093  ;;  %v519_v22 = vmul.f32 0.0, %v2092_v11 }
 0x38a   :  { %v633_v28 = vadd.f32 1.0, %v2094_v14 }
 0x38c   :  { %2095 = vrcp.f32 %v633_v28 }
 0x396   :  { %v2096_v17 = vpop.eup %2095 }
 0x397   :  { %v640_v26 = vmul.f32 %v2096_v17, %v2569_v58 }
 0x3df   :  { %v522_v12 = vpop.permute.xlu1 %521 }
 0x3e0   :  { %v524_v16 = vmul.f32 %v2092_v11, %v522_v12 }
 0x3e2   :  { %526 = vrot.lane.b32.xlu1 %v524_v16, %s2342_s1 }
 0x3ed   :  { %v643_v18 = vpop.permute.xlu0 %642 }
 0x3ee   :  { %v645_v20 = vmul.f32 %v2096_v17, %v643_v18 }
 0x3f0   :  { %647 = vrot.lane.b32.xlu0 %v645_v20, %s2342_s1 }
 0x454   :  { %v527_v23 = vpop.permute.xlu1 %526 }
 0x455   :  { %v2615_v24 = vadd.f32 %v527_v23, %v519_v22 }
 0x457   :  { %2097 = vtanh.f32 %v2615_v24 }
 0x461   :  { %v2098_v25 = vpop.eup %2097 }
 0x462   :  { %532 = vrot.lane.b32.xlu1 %v2098_v25, %s2342_s1  ;;  %v648_v30 = vpop.permute.xlu0 %647 }
 0x463   :  { %v2620_v32 = vadd.f32 %v648_v30, %v640_v26 }
 0x465   :  { %2099 = vtanh.f32 %v2620_v32 }
 0x466   :  { %84 = vperm.xlu1 %2036, %v65_v34   ;;  %2101 = vpow2.f32 %v1977_v35 }
 0x46f   :  { %v2100_v33 = vpop.eup %2099 }
 0x470   :  { %653 = vrot.lane.b32.xlu0 %v2100_v33, %s2342_s1  ;;  %v2102_v36 = vpop.eup %2101 }
 0x471   :  { %v513_v13 = vadd.f32 1.0, %v2102_v36 }
 0x473   :  { %2103 = vrcp.f32 %v513_v13 }
 0x474   :  { %2105 = vpow2.f32 %v1981_v37 }
 0x47d   :  { %v2104_v58 = vpop.eup %2103 }
 0x47e   :  { %v2106_v57 = vpop.eup %2105 }
 0x47f   :  { %v634_v61 = vadd.f32 1.0, %v2106_v57 }
 0x481   :  { %2107 = vrcp.f32 %v634_v61 }
 0x48b   :  { %v2108_v27 = vpop.eup %2107 }
 0x4d4   :  { %v533_v39 = vpop.permute.xlu1 %532 }
 0x4d5   :  { %v535_v59 = vmul.f32 %v2104_v58, %v533_v39 }
 0x4d7   :  { %v536_v60 = vpack.c.bf16 %v535_v59, %v535_v59 }
 0x4d9   :  { %1978 = vmatmul.mubr.msk.bf16.vlgmr.msra.gmra.mrb[4].mxu1 %vm243_vm0, %v536_v60 }
 0x4da   :  { %662 = vmatpush1.bf16.msra.mxu1 %v2544_v49  ;;  %693 = vmatprep.mubr.bf16.mxu1 %v2341_v1 }
 0x4db   :  { %663 = vmatprep.subr.bf16.mxu1 %v2548_v50 }
 0x4de   :  { %664 = vmatpush1.bf16.msra.mxu1 %v2553_v51 }
 0x4df   :  { %665 = vmatprep.subr.bf16.mxu1 %v2557_v52 }
 0x4e2   :  { %666 = vmatpush1.bf16.msra.mxu1 %v2560_v53  ;;  %v654_v38 = vpop.permute.xlu0 %653 }
 0x4e3   :  { %667 = vmatprep.subr.bf16.mxu1 %v2563_v54  ;;  %v656_v62 = vmul.f32 %v2108_v27, %v654_v38 }
 0x4e5   :  { %v657_v63 = vpack.c.bf16 %v656_v62, %v656_v62  ;;  %v85_v23 = vpop.permute.xlu1 %84 }
 0x4e6   :  { %668 = vmatpush1.bf16.msra.mxu1 %v2567_v56  ;;  %v128_v25 = vmul.f32 %v2483_v15, %v85_v23  ;;  %v127_v57 = vmul.f32 %v2503_v29, %v85_v23  ;;  %v66_v23 = vld [vmem:[%s2993_s0 + $0x18] sm:$0xff] }
 0x4e7   :  { %782 = vmatprep.subr.bf16.mxu1 %v2427_v2 }
 0x4e8   :  { %v156_v33 = vadd.f32 %v2490_v19, %v128_v25  ;;  %v155_v59 = vadd.f32 %v2507_v31, %v127_v57 }
 0x4e9   :  { %1982 = vmatmul.mubr.msk.bf16.vlgmr.msra.gmra.mrb[8].mxu1 %vm243_vm0, %v657_v63 }
 0x4ea   :  { %783 = vmatpush1.bf16.msra.mxu1 %v2432_v3  ;;  %814 = vmatprep.mubr.bf16.mxu1 %v2341_v1 }
 0x4eb   :  { %784 = vmatprep.subr.bf16.mxu1 %v2438_v4 }
 0x4ee   :  { %785 = vmatpush1.bf16.msra.mxu1 %v2444_v5 }
 0x4ef   :  { %786 = vmatprep.subr.bf16.mxu1 %v2450_v6 }
 0x4f2   :  { %787 = vmatpush1.bf16.msra.mxu1 %v2455_v7 }
 0x4f3   :  { %788 = vmatprep.subr.bf16.mxu1 %v2463_v9 }
 0x4f6   :  { %789 = vmatpush1.bf16.msra.mxu1 %v2471_v10 }
 0x4f7   :  { %936 = vmatprep.subr.bf16.mxu1 %v2511_v40 }
 0x4f9   :  { %1986 = vmatmul.mubr.msk.bf16.vlgmr.msra.gmra.mrb[12].mxu1 %vm243_vm0, %v657_v63 }
 0x4fa   :  { %937 = vmatpush1.bf16.msra.mxu1 %v2513_v41  ;;  %968 = vmatprep.mubr.bf16.mxu1 %v2341_v1 }
 0x4fb   :  { %938 = vmatprep.subr.bf16.mxu1 %v2515_v42 }
 0x4fe   :  { %939 = vmatpush1.bf16.msra.mxu1 %v2520_v43 }
 0x4ff   :  { %940 = vmatprep.subr.bf16.mxu1 %v2524_v44 }
 0x502   :  { %941 = vmatpush1.bf16.msra.mxu1 %v2528_v45 }
 0x503   :  { %942 = vmatprep.subr.bf16.mxu1 %v2532_v46 }
 0x506   :  { %943 = vmatpush1.bf16.msra.mxu1 %v2536_v47 }
 0x507   :  { %1057 = vmatprep.subr.bf16.mxu1 %v2540_v48 }
 0x5ac   :  { %v574_v0 = vpop.f32.mrb[4].mxu1 }
 0x5ad   :  { %v576_v8 = vpop.f32.mrb[5].mxu1 }
 0x5ae   :  { %v578_v11 = vpop.f32.mrb[6].mxu1 }
 0x5af   :  { %v579_v12 = vpop.f32.mrb[7].mxu1 }
 0x5bc   :  { %v695_v14 = vpop.f32.mrb[8].mxu1 }
 0x5bd   :  { %v696_v16 = vadd.f32 %v695_v14, %v574_v0  ;;  %v697_v28 = vpop.f32.mrb[9].mxu1 }
 0x5be   :  { %v698_v17 = vadd.f32 %v697_v28, %v576_v8  ;;  %v699_v18 = vpop.f32.mrb[10].mxu1 }
 0x5bf   :  { %v700_v20 = vpop.f32.mrb[11].mxu1  ;;  %v702_v58 = vadd.f32 %v696_v16, %v2608_v55 }
 0x5c0   :  { %v703_v22 = vadd.f32 %v698_v17, %v2600_v21 }
 0x5c1   :  { %v1983_v39 = vmul.f32 -1.442695, %v702_v58 }
 0x5c2   :  { %2109 = vtanh.f32 %v703_v22 }
 0x5cc   :  { %v2110_v26 = vpop.eup %2109  ;;  %v816_v30 = vpop.f32.mrb[12].mxu1 }
 0x5cd   :  { %v818_v34 = vpop.f32.mrb[13].mxu1  ;;  %719 = vrot.lane.b32.xlu0 %v2110_v26, %s2342_s1  ;;  %v823_v61 = vadd.f32 %v816_v30, %v155_v59 }
 0x5ce   :  { %v820_v35 = vpop.f32.mrb[14].mxu1  ;;  %v824_v13 = vadd.f32 %v818_v34, %v156_v33  ;;  %v1984_v33 = vmul.f32 -1.442695, %v703_v22 }
 0x5cf   :  { %v821_v36 = vpop.f32.mrb[15].mxu1  ;;  %v1987_v38 = vmul.f32 -1.442695, %v823_v61 }
 0x5d0   :  { %2111 = vtanh.f32 %v824_v13  ;;  %v1988_v36 = vmul.f32 -1.442695, %v824_v13 }
 0x5d1   :  { %2113 = vpow2.f32 %v1983_v39 }
 0x5da   :  { %v2112_v37 = vpop.eup %2111 }
 0x5db   :  { %840 = vrot.lane.b32.xlu1 %v2112_v37, %s2342_s1  ;;  %v2114_v60 = vpop.eup %2113 }
 0x5dc   :  { %v710_v27 = vadd.f32 1.0, %v2114_v60 }
 0x5de   :  { %2115 = vrcp.f32 %v710_v27 }
 0x5df   :  { %2117 = vpow2.f32 %v1987_v38 }
 0x5e8   :  { %v2116_v62 = vpop.eup %2115 }
 0x5e9   :  { %v2118_v0 = vpop.eup %2117  ;;  %v717_v28 = vmul.f32 %v2116_v62, %v2615_v24 }
 0x5ea   :  { %v831_v11 = vadd.f32 1.0, %v2118_v0 }
 0x5ec   :  { %2119 = vrcp.f32 %v831_v11 }
 0x5f6   :  { %v2120_v12 = vpop.eup %2119 }
 0x5f7   :  { %v838_v25 = vmul.f32 %v2120_v12, %v2620_v32 }
 0x63f   :  { %v720_v63 = vpop.permute.xlu0 %719 }
 0x640   :  { %v722_v8 = vmul.f32 %v2116_v62, %v720_v63 }
 0x642   :  { %724 = vrot.lane.b32.xlu0 %v722_v8, %s2342_s1 }
 0x64d   :  { %v841_v14 = vpop.permute.xlu1 %840 }
 0x64e   :  { %v843_v16 = vmul.f32 %v2120_v12, %v841_v14 }
 0x650   :  { %845 = vrot.lane.b32.xlu1 %v843_v16, %s2342_s1 }
 0x6b4   :  { %v725_v17 = vpop.permute.xlu0 %724 }
 0x6b5   :  { %v2668_v18 = vadd.f32 %v725_v17, %v717_v28 }
 0x6b7   :  { %2121 = vtanh.f32 %v2668_v18 }
 0x6c1   :  { %v2122_v20 = vpop.eup %2121 }
 0x6c2   :  { %730 = vrot.lane.b32.xlu0 %v2122_v20, %s2342_s1  ;;  %v846_v26 = vpop.permute.xlu1 %845 }
 0x6c3   :  { %v2676_v30 = vadd.f32 %v846_v26, %v838_v25 }
 0x6c5   :  { %2123 = vtanh.f32 %v2676_v30 }
 0x6c6   :  { %89 = vperm.xlu0 %2035, %v66_v23   ;;  %2125 = vpow2.f32 %v1984_v33 }
 0x6cf   :  { %v2124_v24 = vpop.eup %2123 }
 0x6d0   :  { %851 = vrot.lane.b32.xlu1 %v2124_v24, %s2342_s1  ;;  %v2126_v34 = vpop.eup %2125 }
 0x6d1   :  { %v711_v35 = vadd.f32 1.0, %v2126_v34 }
 0x6d3   :  { %2127 = vrcp.f32 %v711_v35 }
 0x6d4   :  { %2129 = vpow2.f32 %v1988_v36 }
 0x6dd   :  { %v2128_v37 = vpop.eup %2127 }
 0x6de   :  { %v2130_v39 = vpop.eup %2129 }
 0x6df   :  { %v832_v59 = vadd.f32 1.0, %v2130_v39 }
 0x6e1   :  { %2131 = vrcp.f32 %v832_v59 }
 0x6eb   :  { %v2132_v22 = vpop.eup %2131 }
 0x734   :  { %v731_v58 = vpop.permute.xlu0 %730 }
 0x735   :  { %v733_v32 = vmul.f32 %v2128_v37, %v731_v58 }
 0x737   :  { %v734_v57 = vpack.c.bf16 %v733_v32, %v733_v32 }
 0x739   :  { %1985 = vmatmul.mubr.msk.bf16.vlgmr.msra.gmra.mrb[12].mxu0 %vm243_vm0, %v734_v57 }
 0x73a   :  { %860 = vmatpush1.bf16.msra.mxu0 %v2544_v49  ;;  %891 = vmatprep.mubr.bf16.mxu0 %v2341_v1 }
 0x73b   :  { %861 = vmatprep.subr.bf16.mxu0 %v2548_v50 }
 0x73e   :  { %862 = vmatpush1.bf16.msra.mxu0 %v2553_v51 }
 0x73f   :  { %863 = vmatprep.subr.bf16.mxu0 %v2557_v52 }
 0x742   :  { %864 = vmatpush1.bf16.msra.mxu0 %v2560_v53  ;;  %v852_v13 = vpop.permute.xlu1 %851 }
 0x743   :  { %865 = vmatprep.subr.bf16.mxu0 %v2563_v54  ;;  %v854_v60 = vmul.f32 %v2132_v22, %v852_v13 }
 0x745   :  { %v855_v61 = vpack.c.bf16 %v854_v60, %v854_v60  ;;  %v90_v17 = vpop.permute.xlu0 %89 }
 0x746   :  { %866 = vmatpush1.bf16.msra.mxu0 %v2567_v56  ;;  %v130_v20 = vmul.f32 %v2483_v15, %v90_v17  ;;  %v129_v39 = vmul.f32 %v2503_v29, %v90_v17  ;;  %v67_v17 = vld [vmem:[%s2993_s0 + $0x20] sm:$0xff] }
 0x747   :  { %980 = vmatprep.subr.bf16.mxu0 %v2427_v2 }
 0x748   :  { %v158_v24 = vadd.f32 %v2490_v19, %v130_v20  ;;  %v157_v32 = vadd.f32 %v2507_v31, %v129_v39 }
 0x749   :  { %1989 = vmatmul.mubr.msk.bf16.vlgmr.msra.gmra.mrb[16].mxu0 %vm243_vm0, %v855_v61 }
 0x74a   :  { %981 = vmatpush1.bf16.msra.mxu0 %v2432_v3  ;;  %1012 = vmatprep.mubr.bf16.mxu0 %v2341_v1 }
 0x74b   :  { %982 = vmatprep.subr.bf16.mxu0 %v2438_v4 }
 0x74e   :  { %983 = vmatpush1.bf16.msra.mxu0 %v2444_v5 }
 0x74f   :  { %984 = vmatprep.subr.bf16.mxu0 %v2450_v6 }
 0x752   :  { %985 = vmatpush1.bf16.msra.mxu0 %v2455_v7 }
 0x753   :  { %986 = vmatprep.subr.bf16.mxu0 %v2463_v9 }
 0x756   :  { %987 = vmatpush1.bf16.msra.mxu0 %v2471_v10 }
 0x757   :  { %1134 = vmatprep.subr.bf16.mxu0 %v2511_v40 }
 0x759   :  { %1993 = vmatmul.mubr.msk.bf16.vlgmr.msra.gmra.mrb[20].mxu0 %vm243_vm0, %v855_v61 }
 0x75a   :  { %1135 = vmatpush1.bf16.msra.mxu0 %v2513_v41  ;;  %1166 = vmatprep.mubr.bf16.mxu0 %v2341_v1 }
 0x75b   :  { %1136 = vmatprep.subr.bf16.mxu0 %v2515_v42 }
 0x75e   :  { %1137 = vmatpush1.bf16.msra.mxu0 %v2520_v43 }
 0x75f   :  { %1138 = vmatprep.subr.bf16.mxu0 %v2524_v44 }
 0x762   :  { %1139 = vmatpush1.bf16.msra.mxu0 %v2528_v45 }
 0x763   :  { %1140 = vmatprep.subr.bf16.mxu0 %v2532_v46 }
 0x766   :  { %1141 = vmatpush1.bf16.msra.mxu0 %v2536_v47 }
 0x767   :  { %1255 = vmatprep.subr.bf16.mxu0 %v2540_v48 }
 0x80c   :  { %v772_v27 = vpop.f32.mrb[12].mxu0 }
 0x80d   :  { %v774_v38 = vpop.f32.mrb[13].mxu0 }
 0x80e   :  { %v776_v62 = vpop.f32.mrb[14].mxu0 }
 0x80f   :  { %v777_v63 = vpop.f32.mrb[15].mxu0 }
 0x81c   :  { %v893_v0 = vpop.f32.mrb[16].mxu0 }
 0x81d   :  { %v894_v8 = vadd.f32 %v893_v0, %v772_v27  ;;  %v895_v11 = vpop.f32.mrb[17].mxu0 }
 0x81e   :  { %v896_v12 = vadd.f32 %v895_v11, %v774_v38  ;;  %v897_v14 = vpop.f32.mrb[18].mxu0 }
 0x81f   :  { %v898_v16 = vpop.f32.mrb[19].mxu0  ;;  %v900_v37 = vadd.f32 %v894_v8, %v2608_v55 }
 0x820   :  { %v901_v28 = vadd.f32 %v896_v12, %v2600_v21 }
 0x821   :  { %v1990_v58 = vmul.f32 -1.442695, %v900_v37 }
 0x822   :  { %2133 = vtanh.f32 %v901_v28 }
 0x82c   :  { %v2134_v23 = vpop.eup %2133  ;;  %v1014_v25 = vpop.f32.mrb[20].mxu0 }
 0x82d   :  { %v1016_v26 = vpop.f32.mrb[21].mxu0  ;;  %917 = vrot.lane.b32.xlu1 %v2134_v23, %s2342_s1  ;;  %v1021_v59 = vadd.f32 %v1014_v25, %v157_v32 }
 0x82e   :  { %v1018_v33 = vpop.f32.mrb[22].mxu0  ;;  %v1022_v35 = vadd.f32 %v1016_v26, %v158_v24  ;;  %v1991_v26 = vmul.f32 -1.442695, %v901_v28 }
 0x82f   :  { %v1019_v34 = vpop.f32.mrb[23].mxu0  ;;  %v1994_v13 = vmul.f32 -1.442695, %v1021_v59 }
 0x830   :  { %2135 = vtanh.f32 %v1022_v35  ;;  %v1995_v34 = vmul.f32 -1.442695, %v1022_v35 }
 0x831   :  { %2137 = vpow2.f32 %v1990_v58 }
 0x83a   :  { %v2136_v36 = vpop.eup %2135 }
 0x83b   :  { %1038 = vrot.lane.b32.xlu0 %v2136_v36, %s2342_s1  ;;  %v2138_v57 = vpop.eup %2137 }
 0x83c   :  { %v908_v22 = vadd.f32 1.0, %v2138_v57 }
 0x83e   :  { %2139 = vrcp.f32 %v908_v22 }
 0x83f   :  { %2141 = vpow2.f32 %v1994_v13 }
 0x848   :  { %v2140_v60 = vpop.eup %2139 }
 0x849   :  { %v2142_v27 = vpop.eup %2141  ;;  %v915_v11 = vmul.f32 %v2140_v60, %v2668_v18 }
 0x84a   :  { %v1029_v62 = vadd.f32 1.0, %v2142_v27 }
 0x84c   :  { %2143 = vrcp.f32 %v1029_v62 }
 0x856   :  { %v2144_v63 = vpop.eup %2143 }
 0x857   :  { %v1036_v20 = vmul.f32 %v2144_v63, %v2676_v30 }
 0x89f   :  { %v918_v61 = vpop.permute.xlu1 %917 }
 0x8a0   :  { %v920_v38 = vmul.f32 %v2140_v60, %v918_v61 }
 0x8a2   :  { %922 = vrot.lane.b32.xlu1 %v920_v38, %s2342_s1 }
 0x8ad   :  { %v1039_v0 = vpop.permute.xlu0 %1038 }
 0x8ae   :  { %v1041_v8 = vmul.f32 %v2144_v63, %v1039_v0 }
 0x8b0   :  { %1043 = vrot.lane.b32.xlu0 %v1041_v8, %s2342_s1 }
 0x914   :  { %v923_v12 = vpop.permute.xlu1 %922 }
 0x915   :  { %v2721_v14 = vadd.f32 %v923_v12, %v915_v11 }
 0x917   :  { %2145 = vtanh.f32 %v2721_v14 }
 0x921   :  { %v2146_v16 = vpop.eup %2145 }
 0x922   :  { %928 = vrot.lane.b32.xlu1 %v2146_v16, %s2342_s1  ;;  %v1044_v23 = vpop.permute.xlu0 %1043 }
 0x923   :  { %v2729_v25 = vadd.f32 %v1044_v23, %v1036_v20 }
 0x925   :  { %2147 = vtanh.f32 %v2729_v25 }
 0x926   :  { %94 = vperm.xlu1 %2036, %v67_v17   ;;  %2149 = vpow2.f32 %v1991_v26 }
 0x92f   :  { %v2148_v18 = vpop.eup %2147 }
 0x930   :  { %1049 = vrot.lane.b32.xlu0 %v2148_v18, %s2342_s1  ;;  %v2150_v24 = vpop.eup %2149 }
 0x931   :  { %v909_v33 = vadd.f32 1.0, %v2150_v24 }
 0x933   :  { %2151 = vrcp.f32 %v909_v33 }
 0x934   :  { %2153 = vpow2.f32 %v1995_v34 }
 0x93d   :  { %v2152_v36 = vpop.eup %2151 }
 0x93e   :  { %v2154_v58 = vpop.eup %2153 }
 0x93f   :  { %v1030_v32 = vadd.f32 1.0, %v2154_v58 }
 0x941   :  { %2155 = vrcp.f32 %v1030_v32 }
 0x94b   :  { %v2156_v28 = vpop.eup %2155 }
 0x994   :  { %v929_v37 = vpop.permute.xlu1 %928 }
 0x995   :  { %v931_v30 = vmul.f32 %v2152_v36, %v929_v37 }
 0x997   :  { %v932_v39 = vpack.c.bf16 %v931_v30, %v931_v30 }
 0x999   :  { %1992 = vmatmul.mubr.msk.bf16.vlgmr.msra.gmra.mrb[16].mxu1 %vm243_vm0, %v932_v39 }
 0x99a   :  { %1058 = vmatpush1.bf16.msra.mxu1 %v2544_v49  ;;  %1089 = vmatprep.mubr.bf16.mxu1 %v2341_v1 }
 0x99b   :  { %1059 = vmatprep.subr.bf16.mxu1 %v2548_v50 }
 0x99e   :  { %1060 = vmatpush1.bf16.msra.mxu1 %v2553_v51 }
 0x99f   :  { %1061 = vmatprep.subr.bf16.mxu1 %v2557_v52 }
 0x9a2   :  { %1062 = vmatpush1.bf16.msra.mxu1 %v2560_v53  ;;  %v1050_v35 = vpop.permute.xlu0 %1049 }
 0x9a3   :  { %1063 = vmatprep.subr.bf16.mxu1 %v2563_v54  ;;  %v1052_v57 = vmul.f32 %v2156_v28, %v1050_v35 }
 0x9a5   :  { %v1053_v59 = vpack.c.bf16 %v1052_v57, %v1052_v57  ;;  %v95_v61 = vpop.permute.xlu1 %94 }
 0x9a6   :  { %1064 = vmatpush1.bf16.msra.mxu1 %v2567_v56  ;;  %v132_v27 = vmul.f32 %v2483_v15, %v95_v61  ;;  %v131_v23 = vmul.f32 %v2503_v29, %v95_v61 }
 0x9a7   :  { %1178 = vmatprep.subr.bf16.mxu1 %v2427_v2 }
 0x9a8   :  { %v160_v0 = vadd.f32 %v2490_v19, %v132_v27  ;;  %v159_v18 = vadd.f32 %v2507_v31, %v131_v23 }
 0x9a9   :  { %1996 = vmatmul.mubr.msk.bf16.vlgmr.msra.gmra.mrb[20].mxu1 %vm243_vm0, %v1053_v59 }
 0x9aa   :  { %1179 = vmatpush1.bf16.msra.mxu1 %v2432_v3  ;;  %1210 = vmatprep.mubr.bf16.mxu1 %v2341_v1 }
 0x9ab   :  { %1180 = vmatprep.subr.bf16.mxu1 %v2438_v4 }
 0x9ae   :  { %1181 = vmatpush1.bf16.msra.mxu1 %v2444_v5 }
 0x9af   :  { %1182 = vmatprep.subr.bf16.mxu1 %v2450_v6 }
 0x9b2   :  { %1183 = vmatpush1.bf16.msra.mxu1 %v2455_v7 }
 0x9b3   :  { %1184 = vmatprep.subr.bf16.mxu1 %v2463_v9 }
 0x9b6   :  { %1185 = vmatpush1.bf16.msra.mxu1 %v2471_v10 }
 0x9b7   :  { %1332 = vmatprep.subr.bf16.mxu1 %v2511_v40 }
 0x9b9   :  { %2000 = vmatmul.mubr.msk.bf16.vlgmr.msra.gmra.mrb[24].mxu1 %vm243_vm0, %v1053_v59 }
 0x9ba   :  { %1333 = vmatpush1.bf16.msra.mxu1 %v2513_v41  ;;  %1364 = vmatprep.mubr.bf16.mxu1 %v2341_v1 }
 0x9bb   :  { %1334 = vmatprep.subr.bf16.mxu1 %v2515_v42 }
 0x9be   :  { %1335 = vmatpush1.bf16.msra.mxu1 %v2520_v43 }
 0x9bf   :  { %1336 = vmatprep.subr.bf16.mxu1 %v2524_v44 }
 0x9c2   :  { %1337 = vmatpush1.bf16.msra.mxu1 %v2528_v45 }
 0x9c3   :  { %1338 = vmatprep.subr.bf16.mxu1 %v2532_v46 }
 0x9c6   :  { %1339 = vmatpush1.bf16.msra.mxu1 %v2536_v47 }
 0x9c7   :  { %1453 = vmatprep.subr.bf16.mxu1 %v2540_v48 }
 0xa6c   :  { %v970_v2 = vpop.f32.mrb[16].mxu1 }
 0xa6d   :  { %v972_v3 = vpop.f32.mrb[17].mxu1 }
 0xa6e   :  { %v974_v4 = vpop.f32.mrb[18].mxu1 }
 0xa6f   :  { %v975_v5 = vpop.f32.mrb[19].mxu1  ;;  %v68_v4 = vld [vmem:[%s2993_s0 + $0x28] sm:$0xff] }
 0xa7c   :  { %v1091_v6 = vpop.f32.mrb[20].mxu1 }
 0xa7d   :  { %v1092_v7 = vadd.f32 %v1091_v6, %v970_v2  ;;  %v1093_v9 = vpop.f32.mrb[21].mxu1 }
 0xa7e   :  { %v1094_v10 = vadd.f32 %v1093_v9, %v972_v3  ;;  %v1095_v22 = vpop.f32.mrb[22].mxu1 }
 0xa7f   :  { %v1096_v13 = vpop.f32.mrb[23].mxu1  ;;  %v1098_v17 = vadd.f32 %v1092_v7, %v2608_v55 }
 0xa80   :  { %v1099_v60 = vadd.f32 %v1094_v10, %v2600_v21 }
 0xa81   :  { %v1997_v20 = vmul.f32 -1.442695, %v1098_v17 }
 0xa82   :  { %2157 = vtanh.f32 %v1099_v60  ;;  %v1998_v9 = vmul.f32 -1.442695, %v1099_v60 }
 0xa8c   :  { %v2158_v38 = vpop.eup %2157  ;;  %v1212_v62 = vpop.f32.mrb[24].mxu1 }
 0xa8d   :  { %v1214_v63 = vpop.f32.mrb[25].mxu1  ;;  %1115 = vrot.lane.b32.xlu0 %v2158_v38, %s2342_s1  ;;  %v1219_v24 = vadd.f32 %v1212_v62, %v159_v18 }
 0xa8e   :  { %v1216_v8 = vpop.f32.mrb[26].mxu1  ;;  %v1220_v12 = vadd.f32 %v1214_v63, %v160_v0 }
 0xa8f   :  { %v1217_v11 = vpop.f32.mrb[27].mxu1  ;;  %v2001_v34 = vmul.f32 -1.442695, %v1219_v24 }
 0xa90   :  { %2159 = vtanh.f32 %v1220_v12  ;;  %v2002_v13 = vmul.f32 -1.442695, %v1220_v12  ;;  %v2836_v11 = vld [vmem:[%s2996_s3 + $0x34] ss:$8 sps:$4 sm:$0xff]   ;;  %v2842_v12 = vld [vmem:[%s2996_s3 + $0x30] ss:$8 sps:$4 sm:$0xff]  }
 0xa91   :  { %2161 = vpow2.f32 %v1997_v20 }
 0xa9a   :  { %v2160_v16 = vpop.eup %2159 }
 0xa9b   :  { %1236 = vrot.lane.b32.xlu1 %v2160_v16, %s2342_s1  ;;  %v2162_v26 = vpop.eup %2161 }
 0xa9c   :  { %v1106_v33 = vadd.f32 1.0, %v2162_v26 }
 0xa9e   :  { %2163 = vrcp.f32 %v1106_v33 }
 0xa9f   :  { %2165 = vpow2.f32 %v2001_v34 }
 0xaa8   :  { %v2164_v36 = vpop.eup %2163 }
 0xaa9   :  { %v2166_v58 = vpop.eup %2165  ;;  %v1113_v57 = vmul.f32 %v2164_v36, %v2721_v14 }
 0xaaa   :  { %v1227_v39 = vadd.f32 1.0, %v2166_v58 }
 0xaac   :  { %2167 = vrcp.f32 %v1227_v39 }
 0xab6   :  { %v2168_v32 = vpop.eup %2167 }
 0xab7   :  { %v1234_v5 = vmul.f32 %v2168_v32, %v2729_v25 }
 0xaff   :  { %v1116_v37 = vpop.permute.xlu0 %1115 }
 0xb00   :  { %v1118_v30 = vmul.f32 %v2164_v36, %v1116_v37 }
 0xb02   :  { %1120 = vrot.lane.b32.xlu0 %v1118_v30, %s2342_s1 }
 0xb0d   :  { %v1237_v28 = vpop.permute.xlu1 %1236 }
 0xb0e   :  { %v1239_v35 = vmul.f32 %v2168_v32, %v1237_v28 }
 0xb10   :  { %1241 = vrot.lane.b32.xlu1 %v1239_v35, %s2342_s1 }
 0xb74   :  { %v1121_v59 = vpop.permute.xlu0 %1120 }
 0xb75   :  { %v2774_v2 = vadd.f32 %v1121_v59, %v1113_v57 }
 0xb77   :  { %2169 = vtanh.f32 %v2774_v2 }
 0xb81   :  { %v2170_v3 = vpop.eup %2169 }
 0xb82   :  { %1126 = vrot.lane.b32.xlu0 %v2170_v3, %s2342_s1  ;;  %v1242_v6 = vpop.permute.xlu1 %1241 }
 0xb83   :  { %v2782_v7 = vadd.f32 %v1242_v6, %v1234_v5 }
 0xb85   :  { %2171 = vtanh.f32 %v2782_v7 }
 0xb86   :  { %99 = vperm.xlu0 %2035, %v68_v4   ;;  %2173 = vpow2.f32 %v1998_v9 }
 0xb8f   :  { %v2172_v14 = vpop.eup %2171 }
 0xb90   :  { %1247 = vrot.lane.b32.xlu1 %v2172_v14, %s2342_s1  ;;  %v2174_v10 = vpop.eup %2173 }
 0xb91   :  { %v1107_v22 = vadd.f32 1.0, %v2174_v10 }
 0xb93   :  { %2175 = vrcp.f32 %v1107_v22 }
 0xb94   :  { %2177 = vpow2.f32 %v2002_v13 }
 0xb9d   :  { %v2176_v61 = vpop.eup %2175 }
 0xb9e   :  { %v2178_v38 = vpop.eup %2177 }
 0xb9f   :  { %v1228_v63 = vadd.f32 1.0, %v2178_v38 }
 0xba1   :  { %2179 = vrcp.f32 %v1228_v63 }
 0xbab   :  { %v2180_v60 = vpop.eup %2179 }
 0xbf4   :  { %v1127_v27 = vpop.permute.xlu0 %1126 }
 0xbf5   :  { %v1129_v25 = vmul.f32 %v2176_v61, %v1127_v27 }
 0xbf7   :  { %v1130_v62 = vpack.c.bf16 %v1129_v25, %v1129_v25 }
 0xbf9   :  { %1999 = vmatmul.mubr.msk.bf16.vlgmr.msra.gmra.mrb[24].mxu0 %vm243_vm0, %v1130_v62  ;;  %v69_v62 = vld [vmem:[%s2993_s0 + $0x30] sm:$0xff] }
 0xbfa   :  { %1256 = vmatpush1.bf16.msra.mxu0 %v2544_v49  ;;  %1287 = vmatprep.mubr.bf16.mxu0 %v2341_v1  ;;  %v2798_v49 = vld [vmem:[%s2996_s3 + $0x4] ss:$8 sps:$4 sm:$0xff]  }
 0xbfb   :  { %1257 = vmatprep.subr.bf16.mxu0 %v2548_v50 }
 0xbfe   :  { %1258 = vmatpush1.bf16.msra.mxu0 %v2553_v51  ;;  %v2805_v51 = vld [vmem:[%s2996_s3] ss:$8 sps:$4 sm:$0xff]  }
 0xbff   :  { %1259 = vmatprep.subr.bf16.mxu0 %v2557_v52  ;;  %v2812_v52 = vld [vmem:[%s2996_s3 + $0x14] ss:$8 sps:$4 sm:$0xff]  }
 0xc02   :  { %1260 = vmatpush1.bf16.msra.mxu0 %v2560_v53  ;;  %v1248_v0 = vpop.permute.xlu1 %1247  ;;  %v2818_v53 = vld [vmem:[%s2996_s3 + $0x10] ss:$8 sps:$4 sm:$0xff]  }
 0xc03   :  { %1261 = vmatprep.subr.bf16.mxu0 %v2563_v54  ;;  %v1250_v8 = vmul.f32 %v2180_v60, %v1248_v0  ;;  %v2824_v54 = vld [vmem:[%s2996_s3 + $0x24] ss:$8 sps:$4 sm:$0xff]  }
 0xc05   :  { %v1251_v50 = vpack.c.bf16 %v1250_v8, %v1250_v8 }
 0xc06   :  { %1262 = vmatpush1.bf16.msra.mxu0 %v2567_v56  ;;  %v2830_v56 = vld [vmem:[%s2996_s3 + $0x20] ss:$8 sps:$4 sm:$0xff]  }
 0xc07   :  { %1376 = vmatprep.subr.bf16.mxu0 %v2798_v49 }
 0xc09   :  { %2003 = vmatmul.mubr.msk.bf16.vlgmr.msra.gmra.mrb[28].mxu0 %vm243_vm0, %v1251_v50 }
 0xc0a   :  { %1377 = vmatpush1.bf16.msra.mxu0 %v2805_v51  ;;  %1408 = vmatprep.mubr.bf16.mxu0 %v2341_v1 }
 0xc0b   :  { %1378 = vmatprep.subr.bf16.mxu0 %v2812_v52 }
 0xc0e   :  { %1379 = vmatpush1.bf16.msra.mxu0 %v2818_v53 }
 0xc0f   :  { %1380 = vmatprep.subr.bf16.mxu0 %v2824_v54 }
 0xc12   :  { %1381 = vmatpush1.bf16.msra.mxu0 %v2830_v56 }
 0xc13   :  { %1382 = vmatprep.subr.bf16.mxu0 %v2836_v11 }
 0xc16   :  { %1383 = vmatpush1.bf16.msra.mxu0 %v2842_v12 }
 0xc17   :  { %1530 = vmatprep.subr.bf16.mxu0 %v2511_v40 }
 0xc19   :  { %2007 = vmatmul.mubr.msk.bf16.vlgmr.msra.gmra.mrb[32].mxu0 %vm243_vm0, %v1251_v50 }
 0xc1a   :  { %1531 = vmatpush1.bf16.msra.mxu0 %v2513_v41  ;;  %1562 = vmatprep.mubr.bf16.mxu0 %v2341_v1 }
 0xc1b   :  { %1532 = vmatprep.subr.bf16.mxu0 %v2515_v42 }
 0xc1e   :  { %1533 = vmatpush1.bf16.msra.mxu0 %v2520_v43 }
 0xc1f   :  { %1534 = vmatprep.subr.bf16.mxu0 %v2524_v44 }
 0xc22   :  { %1535 = vmatpush1.bf16.msra.mxu0 %v2528_v45  ;;  %v100_v45 = vpop.permute.xlu0 %99 }
 0xc23   :  { %1536 = vmatprep.subr.bf16.mxu0 %v2532_v46  ;;  %v134_v46 = vmul.f32 %v2483_v15, %v100_v45  ;;  %v133_v32 = vmul.f32 %v2503_v29, %v100_v45  ;;  %v2893_v45 = vld [vmem:[#allocation4 + $0x20] ss:$8 sps:$4 sm:$0xff]  }
 0xc25   :  { %v161_v28 = vadd.f32 %v2507_v31, %v133_v32  ;;  %v2285_v32 = vld [vmem:[#allocation6 + $0x20] ss:$8 sps:$4 sm:$0xff]  }
 0xc26   :  { %1537 = vmatpush1.bf16.msra.mxu0 %v2536_v47 }
 0xc27   :  { %1651 = vmatprep.subr.bf16.mxu0 %v2540_v48  ;;  %v162_v48 = vadd.f32 %v2490_v19, %v134_v46  ;;  %v2896_v46 = vld [vmem:[#allocation4 + $0x34] ss:$8 sps:$4 sm:$0xff]  }
 0xccc   :  { %v1168_v40 = vpop.f32.mrb[24].mxu0 }
 0xccd   :  { %v1170_v16 = vpop.f32.mrb[25].mxu0 }
 0xcce   :  { %v1172_v17 = vpop.f32.mrb[26].mxu0 }
 0xccf   :  { %v1173_v41 = vpop.f32.mrb[27].mxu0 }
 0xcdc   :  { %v1289_v20 = vpop.f32.mrb[28].mxu0 }
 0xcdd   :  { %v1290_v23 = vadd.f32 %v1289_v20, %v1168_v40  ;;  %v1291_v18 = vpop.f32.mrb[29].mxu0 }
 0xcde   :  { %v1292_v42 = vadd.f32 %v1291_v18, %v1170_v16  ;;  %v1293_v26 = vpop.f32.mrb[30].mxu0 }
 0xcdf   :  { %v1294_v43 = vpop.f32.mrb[31].mxu0  ;;  %v1296_v30 = vadd.f32 %v1290_v23, %v2608_v55  ;;  %v2884_v26 = vld [vmem:[#allocation4 + $0x14] ss:$8 sps:$4 sm:$0xff]  }
 0xce0   :  { %v1297_v44 = vadd.f32 %v1292_v42, %v2600_v21  ;;  %v2880_v42 = vld [vmem:[#allocation4] ss:$8 sps:$4 sm:$0xff]   ;;  %v2887_v43 = vld [vmem:[#allocation4 + $0x10] ss:$8 sps:$4 sm:$0xff]  }
 0xce1   :  { %v2004_v39 = vmul.f32 -1.442695, %v1296_v30  ;;  %v2283_v30 = vld [vmem:[#allocation6 + $0x10] ss:$8 sps:$4 sm:$0xff]  }
 0xce2   :  { %2181 = vtanh.f32 %v1297_v44  ;;  %v2005_v8 = vmul.f32 -1.442695, %v1297_v44  ;;  %v2890_v44 = vld [vmem:[#allocation4 + $0x24] ss:$8 sps:$4 sm:$0xff]  }
 0xcec   :  { %v2182_v24 = vpop.eup %2181  ;;  %v1410_v47 = vpop.f32.mrb[32].mxu0 }
 0xced   :  { %v1412_v33 = vpop.f32.mrb[33].mxu0  ;;  %1313 = vrot.lane.b32.xlu1 %v2182_v24, %s2342_s1  ;;  %v1417_v57 = vadd.f32 %v1410_v47, %v161_v28  ;;  %v2286_v28 = vld [vmem:[#allocation6 + $0x34] ss:$8 sps:$4 sm:$0xff]  }
 0xcee   :  { %v1414_v34 = vpop.f32.mrb[34].mxu0  ;;  %v1418_v37 = vadd.f32 %v1412_v33, %v162_v48  ;;  %v2899_v33 = vld [vmem:[#allocation4 + $0x30] ss:$8 sps:$4 sm:$0xff]  }
 0xcef   :  { %v1415_v36 = vpop.f32.mrb[35].mxu0  ;;  %v2008_v3 = vmul.f32 -1.442695, %v1417_v57  ;;  %v2288_v57 = vld [vmem:[#allocation4 + $0x4] ss:$8 sps:$4 sm:$0xff]  }
 0xcf0   :  { %2183 = vtanh.f32 %v1418_v37  ;;  %v2009_v16 = vmul.f32 -1.442695, %v1418_v37  ;;  %v2280_v36 = vld [vmem:[#allocation6 + $0x4] ss:$8 sps:$4 sm:$0xff]   ;;  %v2281_v37 = vld [vmem:[#allocation6] ss:$8 sps:$4 sm:$0xff]  }
 0xcf1   :  { %2185 = vpow2.f32 %v2004_v39  ;;  %v2284_v39 = vld [vmem:[#allocation6 + $0x24] ss:$8 sps:$4 sm:$0xff]  }
 0xcfa   :  { %v2184_v58 = vpop.eup %2183 }
 0xcfb   :  { %1434 = vrot.lane.b32.xlu0 %v2184_v58, %s2342_s1  ;;  %v2186_v35 = vpop.eup %2185  ;;  %v2282_v58 = vld [vmem:[#allocation6 + $0x14] ss:$8 sps:$4 sm:$0xff]  }
 0xcfc   :  { %v1304_v59 = vadd.f32 1.0, %v2186_v35  ;;  %v2287_v35 = vld [vmem:[#allocation6 + $0x30] ss:$8 sps:$4 sm:$0xff]  }
 0xcfe   :  { %2187 = vrcp.f32 %v1304_v59 }
 0xcff   :  { %2189 = vpow2.f32 %v2008_v3 }
 0xd08   :  { %v2188_v4 = vpop.eup %2187 }
 0xd09   :  { %v2190_v6 = vpop.eup %2189  ;;  %v1311_v61 = vmul.f32 %v2188_v4, %v2774_v2 }
 0xd0a   :  { %v1425_v9 = vadd.f32 1.0, %v2190_v6 }
 0xd0c   :  { %2191 = vrcp.f32 %v1425_v9 }
 0xd16   :  { %v2192_v10 = vpop.eup %2191 }
 0xd17   :  { %v1432_v63 = vmul.f32 %v2192_v10, %v2782_v7 }
 0xd5f   :  { %v1314_v5 = vpop.permute.xlu1 %1313 }
 0xd60   :  { %v1316_v14 = vmul.f32 %v2188_v4, %v1314_v5 }
 0xd62   :  { %1318 = vrot.lane.b32.xlu1 %v1316_v14, %s2342_s1 }
 0xd6d   :  { %v1435_v22 = vpop.permute.xlu0 %1434 }
 0xd6e   :  { %v1437_v13 = vmul.f32 %v2192_v10, %v1435_v22 }
 0xd70   :  { %1439 = vrot.lane.b32.xlu0 %v1437_v13, %s2342_s1 }
 0xdd4   :  { %v1319_v27 = vpop.permute.xlu1 %1318 }
 0xdd5   :  { %v2867_v38 = vadd.f32 %v1319_v27, %v1311_v61 }
 0xdd7   :  { %2193 = vtanh.f32 %v2867_v38 }
 0xde1   :  { %v2194_v25 = vpop.eup %2193 }
 0xde2   :  { %1324 = vrot.lane.b32.xlu1 %v2194_v25, %s2342_s1  ;;  %v1440_v60 = vpop.permute.xlu0 %1439 }
 0xde3   :  { %v2875_v0 = vadd.f32 %v1440_v60, %v1432_v63 }
 0xde5   :  { %2195 = vtanh.f32 %v2875_v0 }
 0xde6   :  { %104 = vperm.xlu1 %2036, %v69_v62   ;;  %2197 = vpow2.f32 %v2005_v8 }
 0xdef   :  { %v2196_v2 = vpop.eup %2195 }
 0xdf0   :  { %1445 = vrot.lane.b32.xlu0 %v2196_v2, %s2342_s1  ;;  %v2198_v50 = vpop.eup %2197 }
 0xdf1   :  { %v1305_v40 = vadd.f32 1.0, %v2198_v50 }
 0xdf3   :  { %2199 = vrcp.f32 %v1305_v40 }
 0xdf4   :  { %2201 = vpow2.f32 %v2009_v16 }
 0xdfd   :  { %v2200_v17 = vpop.eup %2199 }
 0xdfe   :  { %v2202_v20 = vpop.eup %2201 }
 0xdff   :  { %v1426_v18 = vadd.f32 1.0, %v2202_v20 }
 0xe01   :  { %2203 = vrcp.f32 %v1426_v18 }
 0xe0b   :  { %v2204_v24 = vpop.eup %2203 }
 0xe54   :  { %v1325_v41 = vpop.permute.xlu1 %1324 }
 0xe55   :  { %v1327_v7 = vmul.f32 %v2200_v17, %v1325_v41 }
 0xe57   :  { %v1328_v23 = vpack.c.bf16 %v1327_v7, %v1327_v7 }
 0xe59   :  { %2006 = vmatmul.mubr.msk.bf16.vlgmr.msra.gmra.mrb[28].mxu1 %vm243_vm0, %v1328_v23 }
 0xe5a   :  { %1454 = vmatpush1.bf16.msra.mxu1 %v2880_v42  ;;  %1485 = vmatprep.mubr.bf16.mxu1 %v2341_v1 }
 0xe5b   :  { %1455 = vmatprep.subr.bf16.mxu1 %v2884_v26 }
 0xe5e   :  { %1456 = vmatpush1.bf16.msra.mxu1 %v2887_v43 }
 0xe5f   :  { %1457 = vmatprep.subr.bf16.mxu1 %v2890_v44 }
 0xe62   :  { %1458 = vmatpush1.bf16.msra.mxu1 %v2893_v45  ;;  %v1446_v47 = vpop.permute.xlu0 %1445 }
 0xe63   :  { %1459 = vmatprep.subr.bf16.mxu1 %v2896_v46  ;;  %v1448_v48 = vmul.f32 %v2204_v24, %v1446_v47 }
 0xe65   :  { %v1449_v34 = vpack.c.bf16 %v1448_v48, %v1448_v48  ;;  %v105_v27 = vpop.permute.xlu1 %104 }
 0xe66   :  { %1460 = vmatpush1.bf16.msra.mxu1 %v2899_v33  ;;  %v136_v25 = vmul.f32 %v2483_v15, %v105_v27  ;;  %v135_v20 = vmul.f32 %v2503_v29, %v105_v27 }
 0xe67   :  { %1574 = vmatprep.subr.bf16.mxu1 %v2798_v49 }
 0xe68   :  { %v164_v2 = vadd.f32 %v2490_v19, %v136_v25  ;;  %v163_v7 = vadd.f32 %v2507_v31, %v135_v20 }
 0xe69   :  { %2010 = vmatmul.mubr.msk.bf16.vlgmr.msra.gmra.mrb[32].mxu1 %vm243_vm0, %v1449_v34 }
 0xe6a   :  { %1575 = vmatpush1.bf16.msra.mxu1 %v2805_v51  ;;  %1606 = vmatprep.mubr.bf16.mxu1 %v2341_v1 }
 0xe6b   :  { %1576 = vmatprep.subr.bf16.mxu1 %v2812_v52 }
 0xe6e   :  { %1577 = vmatpush1.bf16.msra.mxu1 %v2818_v53 }
 0xe6f   :  { %1578 = vmatprep.subr.bf16.mxu1 %v2824_v54 }
 0xe72   :  { %1579 = vmatpush1.bf16.msra.mxu1 %v2830_v56 }
 0xe73   :  { %1580 = vmatprep.subr.bf16.mxu1 %v2836_v11 }
 0xe76   :  { %1581 = vmatpush1.bf16.msra.mxu1 %v2842_v12 }
 0xe77   :  { %1728 = vmatprep.subr.bf16.mxu1 %v2280_v36 }
 0xe79   :  { %2014 = vmatmul.mubr.msk.bf16.vlgmr.msra.gmra.mrb[36].mxu1 %vm243_vm0, %v1449_v34 }
 0xe7a   :  { %1729 = vmatpush1.bf16.msra.mxu1 %v2281_v37  ;;  %1760 = vmatprep.mubr.bf16.mxu1 %v2341_v1 }
 0xe7b   :  { %1730 = vmatprep.subr.bf16.mxu1 %v2282_v58 }
 0xe7e   :  { %1731 = vmatpush1.bf16.msra.mxu1 %v2283_v30 }
 0xe7f   :  { %1732 = vmatprep.subr.bf16.mxu1 %v2284_v39 }
 0xe82   :  { %1733 = vmatpush1.bf16.msra.mxu1 %v2285_v32 }
 0xe83   :  { %1734 = vmatprep.subr.bf16.mxu1 %v2286_v28 }
 0xe86   :  { %1735 = vmatpush1.bf16.msra.mxu1 %v2287_v35 }
 0xe87   :  { %1849 = vmatprep.subr.bf16.mxu1 %v2288_v57 }
 0xf2c   :  { %v1366_v59 = vpop.f32.mrb[28].mxu1 }
 0xf2d   :  { %v1368_v3 = vpop.f32.mrb[29].mxu1 }
 0xf2e   :  { %v1370_v4 = vpop.f32.mrb[30].mxu1 }
 0xf2f   :  { %v1371_v5 = vpop.f32.mrb[31].mxu1 }
 0xf3c   :  { %v1487_v6 = vpop.f32.mrb[32].mxu1 }
 0xf3d   :  { %v1488_v14 = vadd.f32 %v1487_v6, %v1366_v59  ;;  %v1489_v9 = vpop.f32.mrb[33].mxu1 }
 0xf3e   :  { %v1490_v10 = vadd.f32 %v1489_v9, %v1368_v3  ;;  %v1491_v22 = vpop.f32.mrb[34].mxu1  ;;  %v70_v3 = vld [vmem:[%s2993_s0 + $0x38] sm:$0xff] }
 0xf3f   :  { %v1492_v13 = vpop.f32.mrb[35].mxu1  ;;  %v1494_v17 = vadd.f32 %v1488_v14, %v2608_v55 }
 0xf40   :  { %v1495_v61 = vadd.f32 %v1490_v10, %v2600_v21 }
 0xf41   :  { %v2011_v41 = vmul.f32 -1.442695, %v1494_v17 }
 0xf42   :  { %2205 = vtanh.f32 %v1495_v61  ;;  %v2012_v14 = vmul.f32 -1.442695, %v1495_v61 }
 0xf4c   :  { %v2206_v62 = vpop.eup %2205  ;;  %v1608_v63 = vpop.f32.mrb[36].mxu1 }
 0xf4d   :  { %v1610_v60 = vpop.f32.mrb[37].mxu1  ;;  %1511 = vrot.lane.b32.xlu0 %v2206_v62, %s2342_s1  ;;  %v1615_v18 = vadd.f32 %v1608_v63, %v163_v7 }
 0xf4e   :  { %v1612_v8 = vpop.f32.mrb[38].mxu1  ;;  %v1616_v40 = vadd.f32 %v1610_v60, %v164_v2 }
 0xf4f   :  { %v1613_v50 = vpop.f32.mrb[39].mxu1  ;;  %v2015_v47 = vmul.f32 -1.442695, %v1615_v18 }
 0xf50   :  { %2207 = vtanh.f32 %v1616_v40  ;;  %v2016_v22 = vmul.f32 -1.442695, %v1616_v40 }
 0xf51   :  { %2209 = vpow2.f32 %v2011_v41 }
 0xf5a   :  { %v2208_v16 = vpop.eup %2207 }
 0xf5b   :  { %1632 = vrot.lane.b32.xlu1 %v2208_v16, %s2342_s1  ;;  %v2210_v23 = vpop.eup %2209 }
 0xf5c   :  { %v1502_v24 = vadd.f32 1.0, %v2210_v23 }
 0xf5e   :  { %2211 = vrcp.f32 %v1502_v24 }
 0xf5f   :  { %2213 = vpow2.f32 %v2015_v47 }
 0xf68   :  { %v2212_v48 = vpop.eup %2211 }
 0xf69   :  { %v2214_v36 = vpop.eup %2213  ;;  %v1509_v28 = vmul.f32 %v2212_v48, %v2867_v38 }
 0xf6a   :  { %v1623_v58 = vadd.f32 1.0, %v2214_v36 }
 0xf6c   :  { %2215 = vrcp.f32 %v1623_v58 }
 0xf76   :  { %v2216_v30 = vpop.eup %2215 }
 0xf77   :  { %v1630_v4 = vmul.f32 %v2216_v30, %v2875_v0 }
 0xfbf   :  { %v1512_v34 = vpop.permute.xlu0 %1511 }
 0xfc0   :  { %v1514_v37 = vmul.f32 %v2212_v48, %v1512_v34 }
 0xfc2   :  { %1516 = vrot.lane.b32.xlu0 %v1514_v37, %s2342_s1 }
 0xfcd   :  { %v1633_v39 = vpop.permute.xlu1 %1632 }
 0xfce   :  { %v1635_v32 = vmul.f32 %v2216_v30, %v1633_v39 }
 0xfd0   :  { %1637 = vrot.lane.b32.xlu1 %v1635_v32, %s2342_s1 }
0x1034   :  { %v1517_v35 = vpop.permute.xlu0 %1516 }
0x1035   :  { %v2925_v57 = vadd.f32 %v1517_v35, %v1509_v28 }
0x1037   :  { %2217 = vtanh.f32 %v2925_v57 }
0x1041   :  { %v2218_v59 = vpop.eup %2217 }
0x1042   :  { %1522 = vrot.lane.b32.xlu0 %v2218_v59, %s2342_s1  ;;  %v1638_v5 = vpop.permute.xlu1 %1637 }
0x1043   :  { %v2933_v6 = vadd.f32 %v1638_v5, %v1630_v4 }
0x1045   :  { %2219 = vtanh.f32 %v2933_v6 }
0x1046   :  { %109 = vperm.xlu0 %2035, %v70_v3   ;;  %2221 = vpow2.f32 %v2012_v14 }
0x104f   :  { %v2220_v38 = vpop.eup %2219 }
0x1050   :  { %1643 = vrot.lane.b32.xlu1 %v2220_v38, %s2342_s1  ;;  %v2222_v9 = vpop.eup %2221 }
0x1051   :  { %v1503_v10 = vadd.f32 1.0, %v2222_v9 }
0x1053   :  { %2223 = vrcp.f32 %v1503_v10 }
0x1054   :  { %2225 = vpow2.f32 %v2016_v22 }
0x105d   :  { %v2224_v13 = vpop.eup %2223 }
0x105e   :  { %v2226_v25 = vpop.eup %2225 }
0x105f   :  { %v1624_v63 = vadd.f32 1.0, %v2226_v25 }
0x1061   :  { %2227 = vrcp.f32 %v1624_v63 }
0x106b   :  { %v2228_v61 = vpop.eup %2227 }
0x10b4   :  { %v1523_v27 = vpop.permute.xlu0 %1522 }
0x10b5   :  { %v1525_v0 = vmul.f32 %v2224_v13, %v1523_v27 }
0x10b7   :  { %v1526_v62 = vpack.c.bf16 %v1525_v0, %v1525_v0 }
0x10b9   :  { %2013 = vmatmul.mubr.msk.bf16.vlgmr.msra.gmra.mrb[36].mxu0 %vm243_vm0, %v1526_v62 }
0x10ba   :  { %1652 = vmatpush1.bf16.msra.mxu0 %v2880_v42  ;;  %1683 = vmatprep.mubr.bf16.mxu0 %v2341_v1 }
0x10bb   :  { %1653 = vmatprep.subr.bf16.mxu0 %v2884_v26 }
0x10be   :  { %1654 = vmatpush1.bf16.msra.mxu0 %v2887_v43 }
0x10bf   :  { %1655 = vmatprep.subr.bf16.mxu0 %v2890_v44 }
0x10c2   :  { %1656 = vmatpush1.bf16.msra.mxu0 %v2893_v45  ;;  %v1644_v60 = vpop.permute.xlu1 %1643 }
0x10c3   :  { %1657 = vmatprep.subr.bf16.mxu0 %v2896_v46  ;;  %v1646_v2 = vmul.f32 %v2228_v61, %v1644_v60 }
0x10c5   :  { %v1647_v8 = vpack.c.bf16 %v1646_v2, %v1646_v2 }
0x10c6   :  { %1658 = vmatpush1.bf16.msra.mxu0 %v2899_v33 }
0x10c7   :  { %1772 = vmatprep.subr.bf16.mxu0 %v2798_v49 }
0x10c9   :  { %2017 = vmatmul.mubr.msk.bf16.vlgmr.msra.gmra.mrb[40].mxu0 %vm243_vm0, %v1647_v8 }
0x10ca   :  { %1773 = vmatpush1.bf16.msra.mxu0 %v2805_v51  ;;  %1804 = vmatprep.mubr.bf16.mxu0 %v2341_v1 }
0x10cb   :  { %1774 = vmatprep.subr.bf16.mxu0 %v2812_v52 }
0x10ce   :  { %1775 = vmatpush1.bf16.msra.mxu0 %v2818_v53 }
0x10cf   :  { %1776 = vmatprep.subr.bf16.mxu0 %v2824_v54 }
0x10d2   :  { %1777 = vmatpush1.bf16.msra.mxu0 %v2830_v56  ;;  %v110_v56 = vpop.permute.xlu0 %109 }
0x10d3   :  { %1778 = vmatprep.subr.bf16.mxu0 %v2836_v11  ;;  %v138_v11 = vmul.f32 %v2483_v15, %v110_v56  ;;  %v137_v15 = vmul.f32 %v2503_v29, %v110_v56 }
0x10d5   :  { %v166_v18 = vadd.f32 %v2490_v19, %v138_v11  ;;  %v165_v58 = vadd.f32 %v2507_v31, %v137_v15  ;;  %v2027_v15 = vld [vmem:[%s3000_s7] ss:$0 sm:$0xff] }
0x10d6   :  { %1779 = vmatpush1.bf16.msra.mxu0 %v2842_v12 }
0x10d9   :  { %2021 = vmatmul.mubr.msk.bf16.vlgmr.msra.gmra.mrb[44].mxu0 %vm243_vm0, %v1647_v8 }
0x118c   :  { %v1564_v49 = vpop.f32.mrb[36].mxu0 }
0x118d   :  { %v1566_v50 = vpop.f32.mrb[37].mxu0 }
0x118e   :  { %v1568_v40 = vpop.f32.mrb[38].mxu0 }
0x118f   :  { %v1569_v51 = vpop.f32.mrb[39].mxu0 }
0x119c   :  { %v1685_v16 = vpop.f32.mrb[40].mxu0 }
0x119d   :  { %v1686_v17 = vadd.f32 %v1685_v16, %v1564_v49  ;;  %v1687_v41 = vpop.f32.mrb[41].mxu0 }
0x119e   :  { %v1688_v52 = vadd.f32 %v1687_v41, %v1566_v50  ;;  %v1689_v20 = vpop.f32.mrb[42].mxu0 }
0x119f   :  { %v1690_v53 = vpop.f32.mrb[43].mxu0  ;;  %v1692_v36 = vadd.f32 %v1686_v17, %v2608_v55 }
0x11a0   :  { %v1693_v54 = vadd.f32 %v1688_v52, %v2600_v21 }
0x11a1   :  { %v2018_v37 = vmul.f32 -1.442695, %v1692_v36 }
0x11a2   :  { %2229 = vtanh.f32 %v1693_v54  ;;  %v2019_v0 = vmul.f32 -1.442695, %v1693_v54 }
0x11ac   :  { %v2230_v7 = vpop.eup %2229  ;;  %v1806_v12 = vpop.f32.mrb[44].mxu0 }
0x11ad   :  { %v1808_v23 = vpop.f32.mrb[45].mxu0  ;;  %1709 = vrot.lane.b32.xlu1 %v2230_v7, %s2342_s1  ;;  %v1813_v39 = vadd.f32 %v1806_v12, %v165_v58 }
0x11ae   :  { %v1810_v24 = vpop.f32.mrb[46].mxu0  ;;  %v1814_v48 = vadd.f32 %v1808_v23, %v166_v18 }
0x11af   :  { %v1811_v47 = vpop.f32.mrb[47].mxu0  ;;  %v2022_v28 = vmul.f32 -1.442695, %v1813_v39 }
0x11b0   :  { %2231 = vtanh.f32 %v1814_v48  ;;  %v2023_v61 = vmul.f32 -1.442695, %v1814_v48 }
0x11b1   :  { %2233 = vpow2.f32 %v2018_v37 }
0x11ba   :  { %v2232_v34 = vpop.eup %2231 }
0x11bb   :  { %1830 = vrot.lane.b32.xlu0 %v2232_v34, %s2342_s1  ;;  %v2234_v30 = vpop.eup %2233 }
0x11bc   :  { %v1700_v32 = vadd.f32 1.0, %v2234_v30 }
0x11be   :  { %2235 = vrcp.f32 %v1700_v32  ;;  %v2028_v32 = vld [vmem:[#allocation3] ss:$0 sm:$0xff] }
0x11bf   :  { %2237 = vpow2.f32 %v2022_v28 }
0x11c8   :  { %v2236_v19 = vpop.eup %2235 }
0x11c9   :  { %v2238_v59 = vpop.eup %2237  ;;  %v1707_v29 = vmul.f32 %v2236_v19, %v2925_v57 }
0x11ca   :  { %v1821_v4 = vadd.f32 1.0, %v2238_v59 }
0x11cc   :  { %2239 = vrcp.f32 %v1821_v4 }
0x11d6   :  { %v2240_v5 = vpop.eup %2239 }
0x11d7   :  { %v1828_v22 = vmul.f32 %v2240_v5, %v2933_v6 }
0x121f   :  { %v1710_v35 = vpop.permute.xlu1 %1709 }
0x1220   :  { %v1712_v3 = vmul.f32 %v2236_v19, %v1710_v35 }
0x1222   :  { %1714 = vrot.lane.b32.xlu1 %v1712_v3, %s2342_s1 }
0x122d   :  { %v1831_v38 = vpop.permute.xlu0 %1830 }
0x122e   :  { %v1833_v14 = vmul.f32 %v2240_v5, %v1831_v38 }
0x1230   :  { %1835 = vrot.lane.b32.xlu0 %v1833_v14, %s2342_s1 }
0x1294   :  { %v1715_v31 = vpop.permute.xlu1 %1714 }
0x1295   :  { %v1717_v9 = vadd.f32 %v1715_v31, %v1707_v29 }
0x1297   :  { %2241 = vtanh.f32 %v1717_v9 }
0x12a1   :  { %v2242_v10 = vpop.eup %2241 }
0x12a2   :  { %1720 = vrot.lane.b32.xlu1 %v2242_v10, %s2342_s1  ;;  %v1836_v13 = vpop.permute.xlu0 %1835 }
0x12a3   :  { %v1838_v27 = vadd.f32 %v1836_v13, %v1828_v22 }
0x12a5   :  { %2243 = vtanh.f32 %v1838_v27 }
0x12a6   :  { %2245 = vpow2.f32 %v2019_v0 }
0x12af   :  { %v2244_v25 = vpop.eup %2243 }
0x12b0   :  { %1841 = vrot.lane.b32.xlu0 %v2244_v25, %s2342_s1  ;;  %v2246_v62 = vpop.eup %2245 }
0x12b1   :  { %v1701_v63 = vadd.f32 1.0, %v2246_v62 }
0x12b3   :  { %2247 = vrcp.f32 %v1701_v63 }
0x12b4   :  { %2249 = vpow2.f32 %v2023_v61 }
0x12bd   :  { %v2248_v57 = vpop.eup %2247 }
0x12be   :  { %v2250_v2 = vpop.eup %2249 }
0x12bf   :  { %v1822_v50 = vadd.f32 1.0, %v2250_v2 }
0x12c1   :  { %2251 = vrcp.f32 %v1822_v50 }
0x12cb   :  { %v2252_v6 = vpop.eup %2251 }
0x1314   :  { %v1721_v60 = vpop.permute.xlu1 %1720 }
0x1315   :  { %v1723_v8 = vmul.f32 %v2248_v57, %v1721_v60 }
0x1317   :  { %v1724_v49 = vpack.c.bf16 %v1723_v8, %v1723_v8 }
0x1319   :  { %2020 = vmatmul.mubr.msk.bf16.vlgmr.msra.gmra.mrb[40].mxu1 %vm243_vm0, %v1724_v49 }
0x131a   :  { %1850 = vmatpush1.bf16.msra.mxu1 %v2880_v42  ;;  %1881 = vmatprep.mubr.bf16.mxu1 %v2341_v1 }
0x131b   :  { %1851 = vmatprep.subr.bf16.mxu1 %v2884_v26 }
0x131e   :  { %1852 = vmatpush1.bf16.msra.mxu1 %v2887_v43 }
0x131f   :  { %1853 = vmatprep.subr.bf16.mxu1 %v2890_v44 }
0x1322   :  { %1854 = vmatpush1.bf16.msra.mxu1 %v2893_v45  ;;  %v1842_v40 = vpop.permute.xlu0 %1841 }
0x1323   :  { %1855 = vmatprep.subr.bf16.mxu1 %v2896_v46  ;;  %v1844_v51 = vmul.f32 %v2252_v6, %v1842_v40 }
0x1325   :  { %v1845_v16 = vpack.c.bf16 %v1844_v51, %v1844_v51 }
0x1326   :  { %1856 = vmatpush1.bf16.msra.mxu1 %v2899_v33 }
0x1329   :  { %2024 = vmatmul.mubr.msk.bf16.vlgmr.msra.gmra.mrb[44].mxu1 %vm243_vm0, %v1845_v16 }
0x13ec   :  { %v1762_v1 = vpop.f32.mrb[40].mxu1 }
0x13ed   :  { %v1764_v42 = vpop.f32.mrb[41].mxu1 }
0x13ee   :  { %v1766_v26 = vpop.f32.mrb[42].mxu1 }
0x13ef   :  { %v1767_v17 = vpop.f32.mrb[43].mxu1 }
0x13fc   :  { %v1883_v41 = vpop.f32.mrb[44].mxu1 }
0x13fd   :  { %v1884_v43 = vadd.f32 %v1883_v41, %v1762_v1  ;;  %v1885_v52 = vpop.f32.mrb[45].mxu1 }
0x13fe   :  { %v1886_v44 = vadd.f32 %v1885_v52, %v1764_v42  ;;  %v1887_v20 = vpop.f32.mrb[46].mxu1 }
0x13ff   :  { %v1888_v45 = vpop.f32.mrb[47].mxu1  ;;  %v1890_v33 = vadd.f32 %v1884_v43, %v2608_v55 }
0x1400   :  { %v1891_v46 = vadd.f32 %v1886_v44, %v2600_v21 }
0x1401   :  { %v2025_v54 = vmul.f32 -1.442695, %v1890_v33 }
0x1402   :  { %2253 = vtanh.f32 %v1891_v46  ;;  %v2026_v48 = vmul.f32 -1.442695, %v1891_v46 }
0x1403   :  { %2255 = vpow2.f32 %v2025_v54 }
0x140c   :  { %v2254_v53 = vpop.eup %2253 }
0x140d   :  { %1907 = vrot.lane.b32.xlu1 %v2254_v53, %s2342_s1  ;;  %v2256_v56 = vpop.eup %2255 }
0x140e   :  { %v1898_v11 = vadd.f32 1.0, %v2256_v56 }
0x1410   :  { %2257 = vrcp.f32 %v1898_v11 }
0x141a   :  { %v2258_v7 = vpop.eup %2257 }
0x141b   :  { %v1905_v18 = vmul.f32 %v2258_v7, %v1717_v9 }
0x147f   :  { %v1908_v12 = vpop.permute.xlu1 %1907 }
0x1480   :  { %v1910_v23 = vmul.f32 %v2258_v7, %v1908_v12 }
0x1482   :  { %1912 = vrot.lane.b32.xlu0 %v1910_v23, %s2342_s1 }
0x14f4   :  { %v1913_v24 = vpop.permute.xlu0 %1912 }
0x14f5   :  { %v1915_v47 = vadd.f32 %v1913_v24, %v1905_v18 }
0x14f7   :  { %2259 = vtanh.f32 %v1915_v47 }
0x14f8   :  { %2261 = vpow2.f32 %v2026_v48 }
0x1501   :  { %v2260_v21 = vpop.eup %2259 }
0x1502   :  { %1918 = vrot.lane.b32.xlu1 %v2260_v21, %s2342_s1  ;;  %v2262_v55 = vpop.eup %2261 }
0x1503   :  { %v1899_v34 = vadd.f32 1.0, %v2262_v55 }
0x1505   :  { %2263 = vrcp.f32 %v1899_v34 }
0x150f   :  { %v2264_v36 = vpop.eup %2263 }
0x1574   :  { %v1919_v37 = vpop.permute.xlu1 %1918 }
0x1575   :  { %v1921_v58 = vmul.f32 %v2264_v36, %v1919_v37 }
0x1577   :  { %v1929_v30 = vmul.f32 %v2027_v15, %v1921_v58 }
0x1579   :  { %v1930_v39 = vsel %vm243_vm0, %v1929_v30, 0.0 }
0x157a   :  { %1931 = vadd.xlane.f32.xlu0 %v1930_v39 }
0x1607   :  { %v1932_v28 = vpop.xlane.xlu0 %1931 }
0x1608   :  { %v1940_v19 = vadd.f32 %v2028_v32, %v1932_v28 }
0x160a   :  { %1942 = vst.msk [vmem:[%s3002_s9] sm:$0xff] %vm1941_vm1, %v1940_v19 }
0x160b   :  { %1947 = vsyncpa [#allocation5], 1 }
0x160c   :  { %1948 = vsyncpa [#allocation7], 1 }

</bundles_post_ra>
